<compile_context>
chip_gen: v5e
topology: v5e:2x2
jax: 0.10.0
libtpu: 0.0.40
codegen_flags: <defaults>
</compile_context>

<pallas_src>
import functools

import jax
import jax.numpy as jnp
from jax.experimental import pallas as pl
from jax.experimental.pallas import tpu as pltpu


def _mlp_kernel(x_ref,            # (tile_b, code_dim)  f32
                w1_ref, b1_ref,   # (256, code_dim) bf16, (256, 1) f32
                w2_ref, b2_ref,   # (256, 256) bf16,      (256, 1) f32
                w3_ref, b3_ref,   # (64, 256) bf16,       (64, 1)  f32
                w4_ref, b4_ref,   # (64, 1)  f32,         (1, 1)   f32
                o_ref):           # (1, tile_b) f32
    # Cast x in-kernel (no wrapper-side transpose/cast pass over HBM).
    xb = x_ref[...].astype(jnp.bfloat16)                      # (tile_b, code_dim)

    # fc1 + ReLU: W1 (256, cd) contracted with x (tile, cd) -> (256, tile_b).
    h = jax.lax.dot_general(w1_ref[...], xb,
                            dimension_numbers=(((1,), (1,)), ((), ())),
                            preferred_element_type=jnp.float32)
    h = jnp.maximum(h + b1_ref[...], 0.0)

    # fc2 + ReLU
    h = jnp.dot(w2_ref[...], h.astype(jnp.bfloat16),
                preferred_element_type=jnp.float32)
    h = jnp.maximum(h + b2_ref[...], 0.0)

    # fc3 + ReLU
    h = jnp.dot(w3_ref[...], h.astype(jnp.bfloat16),
                preferred_element_type=jnp.float32)
    h = jnp.maximum(h + b3_ref[...], 0.0)                     # (64, tile_b)

    # fc4 (out_features = 1) + Sigmoid: VPU mul + XLU sublane reduce (not an
    # M=1 matmul).  w4_ref is already (64, 1) so it broadcasts over lanes.
    z = jnp.sum(h * w4_ref[...], axis=0, keepdims=True) + b4_ref[...]  # (1, tile_b)
    o_ref[...] = jax.nn.sigmoid(z)


def _round_up(n, m):
    return ((n + m - 1) // m) * m


def _cdiv(a, b):
    return -(-a // b)


@functools.partial(jax.jit, static_argnames=("tile_cap",))
def discriminator_mnist_in_code_fwd(x, params, tile_cap=4096):
    """x: [B, code_dim] float32. Returns [B, 1] float32 in (0, 1)."""
    w1, b1, w2, b2, w3, b3, w4, b4 = params
    B, code_dim = x.shape

    # ---- Tile selection (shapes are static under jit: plain Python ints). ----
    # Aim for >= 2 grid steps whenever the batch can be split into two
    # 128-multiple tiles (feeds both TensorCores on v7x; harmless on v5e/v6e),
    # and balance tiles so padding waste stays small at large B.
    B128 = _round_up(B, 128)
    if B128 >= 256:
        n_target = max(2, _cdiv(B128, tile_cap))
        tile = _round_up(_cdiv(B128, n_target), 128)
    else:
        tile = B128
    tile = min(tile, tile_cap)

    B_pad = _round_up(B, tile)
    if B_pad != B:
        x = jnp.pad(x, ((0, B_pad - B), (0, 0)))  # zero rows: harmless, sliced off

    # bf16 matmul operands (f32 accumulation in-kernel); fc4 stays exact f32.
    w1b = w1.astype(jnp.bfloat16)
    w2b = w2.astype(jnp.bfloat16)
    w3b = w3.astype(jnp.bfloat16)
    w4t = w4.T                                   # (64, 1) f32 -- fixes broadcast bug

    n_tiles = B_pad // tile
    full = lambda arr: pl.BlockSpec(arr.shape, lambda i: (0, 0))

    flops = 2 * B_pad * (code_dim * 256 + 256 * 256 + 256 * 64 + 64)
    bytes_accessed = (B_pad * code_dim * 4
                      + (w1b.size + w2b.size + w3b.size) * 2
                      + (w4t.size + b1.size + b2.size + b3.size + b4.size) * 4
                      + B_pad * 4)

    out = pl.pallas_call(
        _mlp_kernel,
        out_shape=jax.ShapeDtypeStruct((1, B_pad), jnp.float32),
        grid_spec=pltpu.PrefetchScalarGridSpec(
            num_scalar_prefetch=0,
            grid=(n_tiles,),
            in_specs=[
                pl.BlockSpec((tile, code_dim), lambda i: (i, 0)),  # x tile (f32, batch rows)
                full(w1b), full(b1),
                full(w2b), full(b2),
                full(w3b), full(b3),
                full(w4t), full(b4),
            ],
            out_specs=pl.BlockSpec((1, tile), lambda i: (0, i)),   # lane-dense output
        ),
        compiler_params=pltpu.CompilerParams(
            dimension_semantics=("parallel",),     # >=2 steps shard across v7x's 2 TCs
            vmem_limit_bytes=32 * 1024 * 1024,     # <10 MiB used at tile=4096; fits v7x 64 MiB
        ),
        cost_estimate=pl.CostEstimate(
            flops=flops, transcendentals=B_pad, bytes_accessed=bytes_accessed),
    )(x, w1b, b1, w2b, b2, w3b, b3, w4t, b4)

    # (1, B_pad) -> (B_pad, 1) is a free row-major reshape; drop padded rows.
    return out.reshape(B_pad, 1)[:B]


def init_params(key, code_dim):
    """Deterministic synthetic init. torch layout: W [out, in], b [out, 1]."""
    dims = [(code_dim, 256), (256, 256), (256, 64), (64, 1)]
    params = []
    for fan_in, fan_out in dims:
        kw, kb, key = jax.random.split(key, 3)
        bound = 1.0 / float(fan_in) ** 0.5     # torch.nn.Linear default range
        w = jax.random.uniform(kw, (fan_out, fan_in), jnp.float32, -bound, bound)
        b = jax.random.uniform(kb, (fan_out, 1), jnp.float32, -bound, bound)
        params += [w, b]
    return tuple(params)


def reference_fwd_f32(x, params):
    w1, b1, w2, b2, w3, b3, w4, b4 = params
    h = jax.nn.relu(x @ w1.T + b1.T)
    h = jax.nn.relu(h @ w2.T + b2.T)
    h = jax.nn.relu(h @ w3.T + b3.T)
    return jax.nn.sigmoid(h @ w4.T + b4.T)


def reference_fwd_mixed(x, params):
    """Emulates the kernel's precision: bf16 matmul operands, f32 accum,
    f32 bias/ReLU, exact f32 fc4."""
    w1, b1, w2, b2, w3, b3, w4, b4 = params
    bf = jnp.bfloat16

    def lin(h, w, b):
        return jnp.dot(h.astype(bf), w.T.astype(bf),
                       preferred_element_type=jnp.float32) + b.T

    h = jax.nn.relu(lin(x, w1, b1))
    h = jax.nn.relu(lin(h, w2, b2))
    h = jax.nn.relu(lin(h, w3, b3))
    z = jnp.dot(h, w4.T) + b4.T                 # exact f32 final layer
    return jax.nn.sigmoid(z)


if __name__ == "__main__":
    code_dim = 32
    key = jax.random.PRNGKey(0)
    kx1, kx2, kp = jax.random.split(key, 3)
    params = init_params(kp, code_dim)

    # Small, non-tile-aligned batch: exercises the padding / single-tile path.
    x_small = jax.random.normal(kx1, (5, code_dim), jnp.float32)
    out_small = jax.block_until_ready(discriminator_mnist_in_code_fwd(x_small, params))
    assert out_small.shape == (5, 1)

    # Larger batch: >=2 grid steps so both v7x TensorCores get work.
    x_big = jax.random.normal(kx2, (512, code_dim), jnp.float32)
    out_big = jax.block_until_ready(discriminator_mnist_in_code_fwd(x_big, params))
    assert out_big.shape == (512, 1)

    for x, out in ((x_small, out_small), (x_big, out_big)):
        ref_mixed = reference_fwd_mixed(x, params)
        ref_f32 = reference_fwd_f32(x, params)
        assert jnp.allclose(out, ref_mixed, atol=2e-3, rtol=2e-3), \
            float(jnp.max(jnp.abs(out - ref_mixed)))
        assert jnp.allclose(out, ref_f32, atol=3e-2, rtol=3e-2), \
            float(jnp.max(jnp.abs(out - ref_f32)))
        assert bool(jnp.all((out >= 0.0) & (out <= 1.0)))

    print("KERNEL_OK")
</pallas_src>

<mosaic_0001>
module attributes {stable_mosaic.version = 11 : i64} {
  func.func @_mlp_kernel(%arg0: i32, %arg1: memref<128x32xf32, #tpu.memory_space<vmem>>, %arg2: memref<256x32xbf16, #tpu.memory_space<vmem>>, %arg3: memref<256x1xf32, #tpu.memory_space<vmem>>, %arg4: memref<256x256xbf16, #tpu.memory_space<vmem>>, %arg5: memref<256x1xf32, #tpu.memory_space<vmem>>, %arg6: memref<64x256xbf16, #tpu.memory_space<vmem>>, %arg7: memref<64x1xf32, #tpu.memory_space<vmem>>, %arg8: memref<64x1xf32, #tpu.memory_space<vmem>>, %arg9: memref<1x1xf32, #tpu.memory_space<vmem>>, %arg10: memref<1x128xf32, #tpu.memory_space<vmem>>) attributes {dimension_semantics = [#tpu.dimension_semantics<parallel>], iteration_bounds = array<i64: 1>, scalar_prefetch = 0 : i64, scratch_operands = 0 : i64, tpu.core_type = #tpu.core_type<tc>, window_params = [{transform_indices = @transform_0, window_bounds = array<i64: 128, 32>}, {pipeline_mode = #tpu.pipeline_mode<synchronous>, transform_indices = @transform_1, window_bounds = array<i64: 256, 32>}, {pipeline_mode = #tpu.pipeline_mode<synchronous>, transform_indices = @transform_2, window_bounds = array<i64: 256, 1>}, {pipeline_mode = #tpu.pipeline_mode<synchronous>, transform_indices = @transform_3, window_bounds = array<i64: 256, 256>}, {pipeline_mode = #tpu.pipeline_mode<synchronous>, transform_indices = @transform_4, window_bounds = array<i64: 256, 1>}, {pipeline_mode = #tpu.pipeline_mode<synchronous>, transform_indices = @transform_5, window_bounds = array<i64: 64, 256>}, {pipeline_mode = #tpu.pipeline_mode<synchronous>, transform_indices = @transform_6, window_bounds = array<i64: 64, 1>}, {pipeline_mode = #tpu.pipeline_mode<synchronous>, transform_indices = @transform_7, window_bounds = array<i64: 64, 1>}, {pipeline_mode = #tpu.pipeline_mode<synchronous>, transform_indices = @transform_8, window_bounds = array<i64: 1, 1>}, {transform_indices = @transform_9, window_bounds = array<i64: 1, 128>}]} {
    %c0 = arith.constant 0 : index
    %c0_0 = arith.constant 0 : index
    %0 = vector.load %arg1[%c0, %c0_0] : memref<128x32xf32, #tpu.memory_space<vmem>>, vector<128x32xf32>
    %1 = arith.truncf %0 : vector<128x32xf32> to vector<128x32xbf16>
    %c0_1 = arith.constant 0 : index
    %c0_2 = arith.constant 0 : index
    %2 = vector.load %arg2[%c0_1, %c0_2] : memref<256x32xbf16, #tpu.memory_space<vmem>>, vector<256x32xbf16>
    %cst = arith.constant dense<0.000000e+00> : vector<256x128xf32>
    %3 = tpu.matmul %2, %1, %cst {dimension_numbers = #tpu.dot_dimension_numbers<[1], [1], [0], [0], [0, 0, 1, 0], [], []>} : vector<256x32xbf16>, vector<128x32xbf16>, vector<256x128xf32> -> vector<256x128xf32>
    %c0_3 = arith.constant 0 : index
    %c0_4 = arith.constant 0 : index
    %4 = vector.load %arg3[%c0_3, %c0_4] : memref<256x1xf32, #tpu.memory_space<vmem>>, vector<256x1xf32>
    %5 = vector.broadcast %4 : vector<256x1xf32> to vector<256x128xf32>
    %6 = arith.addf %3, %5 : vector<256x128xf32>
    %cst_5 = arith.constant 0.000000e+00 : f32
    %7 = vector.broadcast %cst_5 : f32 to vector<256x128xf32>
    %8 = arith.maximumf %6, %7 : vector<256x128xf32>
    %c0_6 = arith.constant 0 : index
    %c0_7 = arith.constant 0 : index
    %9 = vector.load %arg4[%c0_6, %c0_7] : memref<256x256xbf16, #tpu.memory_space<vmem>>, vector<256x256xbf16>
    %10 = arith.truncf %8 : vector<256x128xf32> to vector<256x128xbf16>
    %cst_8 = arith.constant dense<0.000000e+00> : vector<256x128xf32>
    %11 = tpu.matmul %9, %10, %cst_8 {dimension_numbers = #tpu.dot_dimension_numbers<[1], [0], [0], [1], [0, 0, 1, 1], [], []>} : vector<256x256xbf16>, vector<256x128xbf16>, vector<256x128xf32> -> vector<256x128xf32>
    %c0_9 = arith.constant 0 : index
    %c0_10 = arith.constant 0 : index
    %12 = vector.load %arg5[%c0_9, %c0_10] : memref<256x1xf32, #tpu.memory_space<vmem>>, vector<256x1xf32>
    %13 = vector.broadcast %12 : vector<256x1xf32> to vector<256x128xf32>
    %14 = arith.addf %11, %13 : vector<256x128xf32>
    %cst_11 = arith.constant 0.000000e+00 : f32
    %15 = vector.broadcast %cst_11 : f32 to vector<256x128xf32>
    %16 = arith.maximumf %14, %15 : vector<256x128xf32>
    %c0_12 = arith.constant 0 : index
    %c0_13 = arith.constant 0 : index
    %17 = vector.load %arg6[%c0_12, %c0_13] : memref<64x256xbf16, #tpu.memory_space<vmem>>, vector<64x256xbf16>
    %18 = arith.truncf %16 : vector<256x128xf32> to vector<256x128xbf16>
    %cst_14 = arith.constant dense<0.000000e+00> : vector<64x128xf32>
    %19 = tpu.matmul %17, %18, %cst_14 {dimension_numbers = #tpu.dot_dimension_numbers<[1], [0], [0], [1], [0, 0, 1, 1], [], []>} : vector<64x256xbf16>, vector<256x128xbf16>, vector<64x128xf32> -> vector<64x128xf32>
    %c0_15 = arith.constant 0 : index
    %c0_16 = arith.constant 0 : index
    %20 = vector.load %arg7[%c0_15, %c0_16] : memref<64x1xf32, #tpu.memory_space<vmem>>, vector<64x1xf32>
    %21 = vector.broadcast %20 : vector<64x1xf32> to vector<64x128xf32>
    %22 = arith.addf %19, %21 : vector<64x128xf32>
    %cst_17 = arith.constant 0.000000e+00 : f32
    %23 = vector.broadcast %cst_17 : f32 to vector<64x128xf32>
    %24 = arith.maximumf %22, %23 : vector<64x128xf32>
    %c0_18 = arith.constant 0 : index
    %c0_19 = arith.constant 0 : index
    %25 = vector.load %arg8[%c0_18, %c0_19] : memref<64x1xf32, #tpu.memory_space<vmem>>, vector<64x1xf32>
    %26 = vector.broadcast %25 : vector<64x1xf32> to vector<64x128xf32>
    %27 = arith.mulf %24, %26 : vector<64x128xf32>
    %cst_20 = arith.constant dense<0.000000e+00> : vector<128xf32>
    %28 = vector.multi_reduction <add>, %27, %cst_20 [0] : vector<64x128xf32> to vector<128xf32>
    %29 = vector.shape_cast %28 : vector<128xf32> to vector<1x128xf32>
    %c0_21 = arith.constant 0 : index
    %c0_22 = arith.constant 0 : index
    %30 = vector.load %arg9[%c0_21, %c0_22] : memref<1x1xf32, #tpu.memory_space<vmem>>, vector<1x1xf32>
    %31 = vector.broadcast %30 : vector<1x1xf32> to vector<1x128xf32>
    %32 = arith.addf %29, %31 : vector<1x128xf32>
    %33 = arith.negf %32 : vector<1x128xf32>
    %34 = math.exp %33 : vector<1x128xf32>
    %cst_23 = arith.constant 1.000000e+00 : f32
    %35 = vector.broadcast %cst_23 : f32 to vector<1x128xf32>
    %36 = arith.addf %35, %34 : vector<1x128xf32>
    %37 = arith.divf %35, %36 : vector<1x128xf32>
    %c0_24 = arith.constant 0 : index
    %c0_25 = arith.constant 0 : index
    %38 = vector.load %arg10[%c0_24, %c0_25] : memref<1x128xf32, #tpu.memory_space<vmem>>, vector<1x128xf32>
    tpu.vector_store %arg10[%c0_24, %c0_25], %37 {strides = array<i32>} : memref<1x128xf32, #tpu.memory_space<vmem>>, vector<1x128xf32>,
    return
  }
  func.func @transform_0(%arg0: i32) -> (i32, i32) {
    %c0_i32 = arith.constant 0 : i32
    %c0_i32_0 = arith.constant 0 : i32
    return %arg0, %c0_i32 : i32, i32
  }
  func.func @transform_1(%arg0: i32) -> (i32, i32) {
    %c0_i32 = arith.constant 0 : i32
    %c0_i32_0 = arith.constant 0 : i32
    %c0_i32_1 = arith.constant 0 : i32
    return %c0_i32, %c0_i32_0 : i32, i32
  }
  func.func @transform_2(%arg0: i32) -> (i32, i32) {
    %c0_i32 = arith.constant 0 : i32
    %c0_i32_0 = arith.constant 0 : i32
    %c0_i32_1 = arith.constant 0 : i32
    return %c0_i32, %c0_i32_0 : i32, i32
  }
  func.func @transform_3(%arg0: i32) -> (i32, i32) {
    %c0_i32 = arith.constant 0 : i32
    %c0_i32_0 = arith.constant 0 : i32
    %c0_i32_1 = arith.constant 0 : i32
    return %c0_i32, %c0_i32_0 : i32, i32
  }
  func.func @transform_4(%arg0: i32) -> (i32, i32) {
    %c0_i32 = arith.constant 0 : i32
    %c0_i32_0 = arith.constant 0 : i32
    %c0_i32_1 = arith.constant 0 : i32
    return %c0_i32, %c0_i32_0 : i32, i32
  }
  func.func @transform_5(%arg0: i32) -> (i32, i32) {
    %c0_i32 = arith.constant 0 : i32
    %c0_i32_0 = arith.constant 0 : i32
    %c0_i32_1 = arith.constant 0 : i32
    return %c0_i32, %c0_i32_0 : i32, i32
  }
  func.func @transform_6(%arg0: i32) -> (i32, i32) {
    %c0_i32 = arith.constant 0 : i32
    %c0_i32_0 = arith.constant 0 : i32
    %c0_i32_1 = arith.constant 0 : i32
    return %c0_i32, %c0_i32_0 : i32, i32
  }
  func.func @transform_7(%arg0: i32) -> (i32, i32) {
    %c0_i32 = arith.constant 0 : i32
    %c0_i32_0 = arith.constant 0 : i32
    %c0_i32_1 = arith.constant 0 : i32
    return %c0_i32, %c0_i32_0 : i32, i32
  }
  func.func @transform_8(%arg0: i32) -> (i32, i32) {
    %c0_i32 = arith.constant 0 : i32
    %c0_i32_0 = arith.constant 0 : i32
    %c0_i32_1 = arith.constant 0 : i32
    return %c0_i32, %c0_i32_0 : i32, i32
  }
  func.func @transform_9(%arg0: i32) -> (i32, i32) {
    %c0_i32 = arith.constant 0 : i32
    %c0_i32_0 = arith.constant 0 : i32
    return %c0_i32, %arg0 : i32, i32
  }
}

</mosaic_0001>

<bundles_post_ra>
// kernel: discriminator_mnist_in_code_fwd.1
= control target key start
LH: loop header
LB: loop body
LE: loop exit
PB: predicated region body
PF: predicated region fallthrough
CT: control target
= control target key end

     0   :  { %v1758_v0 = vmov 0   ;;  %vm362_vm0 = vcmask 261120   ;;  %s2610_s2 = inlined_call_operand.vmem [shape: f32[256,1], index: 2, kind: input, shape index: {}]   ;;  %s2611_s0 = inlined_call_operand.vmem [shape: f32[128,32], index: 0, kind: input, shape index: {}]   ;;  %s2612_s1 = inlined_call_operand.vmem [shape: bf16[256,32], index: 1, kind: input, shape index: {}]   ;;  %s2613_s4 = inlined_call_operand.vmem [shape: f32[256,1], index: 4, kind: input, shape index: {}]   ;;  %s2614_s6 = inlined_call_operand.vmem [shape: f32[64,1], index: 6, kind: input, shape index: {}]   ;;  %s2615_s7 = inlined_call_operand.vmem [shape: f32[64,1], index: 7, kind: input, shape index: {}]   ;;  %s2616_s8 = inlined_call_operand.<no memory space> [shape: f32[1,1], index: 8, kind: input, shape index: {}]   ;;  %s2617_s3 = inlined_call_operand.vmem [shape: bf16[256,256], index: 3, kind: input, shape index: {}]   ;;  %s2618_s5 = inlined_call_operand.vmem [shape: bf16[64,256], index: 5, kind: input, shape index: {}]   ;;  %s2619_s9 = inlined_call_operand.vmem [shape: f32[1,128], index: 9, kind: output, shape index: {}]  }
   0x1   :  { %1751 = vset.pattern.permute.xlu0 %v1758_v0  ;;  %v120_v1 = vld [vmem:[%s2610_s2 + $0xf0] sm:$0xff]  ;;  %v49_v3 = vld [vmem:[%s2611_s0 + $0x78] sm:$0xff]  ;;  %1752 = vset.pattern.permute.xlu1 %v1758_v0  ;;  %v46_v6 = vld [vmem:[%s2611_s0 + $0x60] sm:$0xff] }
   0x2   :  { %v48_v2 = vld [vmem:[%s2611_s0 + $0x70] sm:$0xff]  ;;  %274 = vperm.xlu0 %1751, %v120_v1   ;;  %1753 = vset.pattern.permute.xlu2 %v1758_v0  ;;  %v47_v7 = vld [vmem:[%s2611_s0 + $0x68] sm:$0xff]  ;;  %v121_v10 = vld [vmem:[%s2610_s2 + $0xf8] sm:$0xff] }
   0x3   :  { %v57_v4 = vpack.c.bf16 %v49_v3, %v48_v2  ;;  %v104_v5 = vld [vmem:[%s2610_s2 + $0x70] sm:$0xff]  ;;  %v56_v9 = vpack.c.bf16 %v47_v7, %v46_v6  ;;  %v118_v11 = vld [vmem:[%s2610_s2 + $0xe0] sm:$0xff]  ;;  %v105_v12 = vld [vmem:[%s2610_s2 + $0x78] sm:$0xff] }
   0x4   :  { %194 = vperm.xlu1 %1752, %v104_v5   ;;  %264 = vperm.xlu2 %1753, %v118_v11   ;;  %v44_v14 = vld [vmem:[%s2611_s0 + $0x50] sm:$0xff]  ;;  %v45_v15 = vld [vmem:[%s2611_s0 + $0x58] sm:$0xff]  ;;  %v119_v16 = vld [vmem:[%s2610_s2 + $0xe8] sm:$0xff] }
   0x5   :  { %v433_v8 = vsel %vm362_vm0, %v57_v4, 0  ;;  %v430_v13 = vsel %vm362_vm0, %v56_v9, 0  ;;  %v55_v17 = vpack.c.bf16 %v45_v15, %v44_v14  ;;  %v102_v18 = vld [vmem:[%s2610_s2 + $0x60] sm:$0xff]  ;;  %v103_v19 = vld [vmem:[%s2610_s2 + $0x68] sm:$0xff]  ;;  %v116_v23 = vld [vmem:[%s2610_s2 + $0xd0] sm:$0xff] }
   0x6   :  { %435 = vmatpush.bf16.xpose.msra.mxu0 %v433_v8  ;;  %1742 = vmatpush.bf16.xpose.msra.mxu3 %v433_v8  ;;  %v42_v21 = vld [vmem:[%s2611_s0 + $0x40] sm:$0xff]  ;;  %v43_v22 = vld [vmem:[%s2611_s0 + $0x48] sm:$0xff]  ;;  %v117_v25 = vld [vmem:[%s2610_s2 + $0xd8] sm:$0xff] }
   0x7   :  { %v427_v20 = vsel %vm362_vm0, %v55_v17, 0  ;;  %v54_v24 = vpack.c.bf16 %v43_v22, %v42_v21  ;;  %v100_v26 = vld [vmem:[%s2610_s2 + $0x50] sm:$0xff]  ;;  %v41_v29 = vld [vmem:[%s2611_s0 + $0x38] sm:$0xff]  ;;  %v114_v32 = vld [vmem:[%s2610_s2 + $0xc0] sm:$0xff] }
   0x8   :  { %v40_v28 = vld [vmem:[%s2611_s0 + $0x30] sm:$0xff]  ;;  %v101_v30 = vld [vmem:[%s2610_s2 + $0x58] sm:$0xff]  ;;  %v115_v33 = vld [vmem:[%s2610_s2 + $0xc8] sm:$0xff] }
   0x9   :  { %v424_v27 = vsel %vm362_vm0, %v54_v24, 0  ;;  %v53_v31 = vpack.c.bf16 %v41_v29, %v40_v28  ;;  %v38_v35 = vld [vmem:[%s2611_s0 + $0x20] sm:$0xff]  ;;  %v39_v36 = vld [vmem:[%s2611_s0 + $0x28] sm:$0xff]  ;;  %v112_v40 = vld [vmem:[%s2610_s2 + $0xb0] sm:$0xff] }
   0xa   :  { %279 = vperm.xlu0 %1751, %v121_v10   ;;  %v98_v37 = vld [vmem:[%s2610_s2 + $0x40] sm:$0xff]  ;;  %v52_v38 = vpack.c.bf16 %v39_v36, %v38_v35  ;;  %v99_v39 = vld [vmem:[%s2610_s2 + $0x48] sm:$0xff]  ;;  %v36_v42 = vld [vmem:[%s2611_s0 + $0x10] sm:$0xff] }
   0xb   :  { %v421_v34 = vsel %vm362_vm0, %v53_v31, 0  ;;  %v37_v43 = vld [vmem:[%s2611_s0 + $0x18] sm:$0xff]  ;;  %v96_v46 = vld [vmem:[%s2610_s2 + $0x30] sm:$0xff]  ;;  %v34_v49 = vld [vmem:[%s2611_s0] sm:$0xff] }
   0xc   :  { %199 = vperm.xlu1 %1752, %v105_v12   ;;  %269 = vperm.xlu2 %1753, %v119_v16   ;;  %v418_v41 = vsel %vm362_vm0, %v52_v38, 0  ;;  %v113_v44 = vld [vmem:[%s2610_s2 + $0xb8] sm:$0xff]  ;;  %v51_v45 = vpack.c.bf16 %v37_v43, %v36_v42  ;;  %v35_v50 = vld [vmem:[%s2611_s0 + $0x8] sm:$0xff]  ;;  %v110_v51 = vld [vmem:[%s2610_s2 + $0xa0] sm:$0xff] }
   0xd   :  { %v97_v47 = vld [vmem:[%s2610_s2 + $0x38] sm:$0xff]  ;;  %v50_v52 = vpack.c.bf16 %v35_v50, %v34_v49  ;;  %v111_v53 = vld [vmem:[%s2610_s2 + $0xa8] sm:$0xff]  ;;  %v94_v54 = vld [vmem:[%s2610_s2 + $0x20] sm:$0xff] }
   0xe   :  { %436 = vmatpush.bf16.xpose.msra.mxu0 %v430_v13  ;;  %1743 = vmatpush.bf16.xpose.msra.mxu3 %v430_v13  ;;  %v415_v48 = vsel %vm362_vm0, %v51_v45, 0  ;;  %v95_v56 = vld [vmem:[%s2610_s2 + $0x28] sm:$0xff]  ;;  %v108_v57 = vld [vmem:[%s2610_s2 + $0x90] sm:$0xff]  ;;  %v1686_v58 = vld [vmem:[%s2612_s1] sm:$0xff] }
   0xf   :  { %v412_v55 = vsel %vm362_vm0, %v50_v52, 0  ;;  %v109_v59 = vld [vmem:[%s2610_s2 + $0x98] sm:$0xff]  ;;  %v92_v60 = vld [vmem:[%s2610_s2 + $0x10] sm:$0xff]  ;;  %v106_v62 = vld [vmem:[%s2610_s2 + $0x80] sm:$0xff] }
  0x10   :  { %v93_v61 = vld [vmem:[%s2610_s2 + $0x18] sm:$0xff]  ;;  %v107_v63 = vld [vmem:[%s2610_s2 + $0x88] sm:$0xff]  ;;  %v90_v0 = vld [vmem:[%s2610_s2] sm:$0xff] }
  0x11   :  { %v1687_v1 = vld [vmem:[%s2612_s1 + $0x8] sm:$0xff]  ;;  %v618_v3 = vld [vmem:[%s2613_s4 + $0x70] sm:$0xff]  ;;  %v619_v4 = vld [vmem:[%s2613_s4 + $0x78] sm:$0xff] }
  0x12   :  { %184 = vperm.xlu0 %1751, %v102_v18   ;;  %v91_v2 = vld [vmem:[%s2610_s2 + $0x8] sm:$0xff]  ;;  %v616_v5 = vld [vmem:[%s2613_s4 + $0x60] sm:$0xff]  ;;  %v614_v7 = vld [vmem:[%s2613_s4 + $0x50] sm:$0xff] }
  0x13   :  { %v617_v6 = vld [vmem:[%s2613_s4 + $0x68] sm:$0xff]  ;;  %v1688_v8 = vld [vmem:[%s2612_s1 + $0x10] sm:$0xff]  ;;  %v615_v9 = vld [vmem:[%s2613_s4 + $0x58] sm:$0xff] }
  0x14   :  { %189 = vperm.xlu1 %1752, %v103_v19   ;;  %254 = vperm.xlu2 %1753, %v116_v23   ;;  %v612_v10 = vld [vmem:[%s2613_s4 + $0x40] sm:$0xff]  ;;  %v613_v11 = vld [vmem:[%s2613_s4 + $0x48] sm:$0xff]  ;;  %v610_v12 = vld [vmem:[%s2613_s4 + $0x30] sm:$0xff] }
  0x15   :  { %v611_v13 = vld [vmem:[%s2613_s4 + $0x38] sm:$0xff]  ;;  %v608_v14 = vld [vmem:[%s2613_s4 + $0x20] sm:$0xff]  ;;  %v609_v16 = vld [vmem:[%s2613_s4 + $0x28] sm:$0xff] }
  0x16   :  { %437 = vmatpush.bf16.xpose.msra.mxu0 %v427_v20  ;;  %1744 = vmatpush.bf16.xpose.msra.mxu3 %v427_v20  ;;  %v1689_v15 = vld [vmem:[%s2612_s1 + $0x18] sm:$0xff]  ;;  %v606_v19 = vld [vmem:[%s2613_s4 + $0x10] sm:$0xff]  ;;  %v1699_v20 = vld [vmem:[%s2612_s1 + $0x68] sm:$0xff] }
  0x17   :  { %v607_v21 = vld [vmem:[%s2613_s4 + $0x18] sm:$0xff]  ;;  %v604_v22 = vld [vmem:[%s2613_s4] sm:$0xff]  ;;  %v630_v35 = vld [vmem:[%s2613_s4 + $0xd0] sm:$0xff] }
  0x18   :  { %v635_v28 = vld [vmem:[%s2613_s4 + $0xf8] sm:$0xff]  ;;  %v632_v31 = vld [vmem:[%s2613_s4 + $0xe0] sm:$0xff]  ;;  %v626_v45 = vld [vmem:[%s2613_s4 + $0xb0] sm:$0xff] }
  0x19   :  { %v631_v38 = vld [vmem:[%s2613_s4 + $0xd8] sm:$0xff]  ;;  %v625_v52 = vld [vmem:[%s2613_s4 + $0xa8] sm:$0xff] }
  0x1a   :  { %259 = vperm.xlu0 %1751, %v117_v25   ;;  %v605_v25 = vld [vmem:[%s2613_s4 + $0x8] sm:$0xff] }
  0x1c   :  { %174 = vperm.xlu1 %1752, %v100_v26   ;;  %179 = vperm.xlu2 %1753, %v101_v30   ;;  %v634_v26 = vld [vmem:[%s2613_s4 + $0xf0] sm:$0xff] }
  0x1e   :  { %438 = vmatpush.bf16.xpose.msra.mxu0 %v424_v27  ;;  %1745 = vmatpush.bf16.xpose.msra.mxu3 %v424_v27  ;;  %v1690_v27 = vld [vmem:[%s2612_s1 + $0x20] sm:$0xff] }
  0x22   :  { %244 = vperm.xlu0 %1751, %v114_v32   ;;  %v1700_v32 = vld [vmem:[%s2612_s1 + $0x70] sm:$0xff] }
  0x24   :  { %249 = vperm.xlu1 %1752, %v115_v33   ;;  %164 = vperm.xlu2 %1753, %v98_v37  }
  0x26   :  { %439 = vmatpush.bf16.xpose.msra.mxu0 %v421_v34  ;;  %1746 = vmatpush.bf16.xpose.msra.mxu3 %v421_v34  ;;  %v633_v34 = vld [vmem:[%s2613_s4 + $0xe8] sm:$0xff] }
  0x2a   :  { %169 = vperm.xlu0 %1751, %v99_v39   ;;  %v628_v39 = vld [vmem:[%s2613_s4 + $0xc0] sm:$0xff] }
  0x2c   :  { %234 = vperm.xlu1 %1752, %v112_v40   ;;  %239 = vperm.xlu2 %1753, %v113_v44   ;;  %v1691_v40 = vld [vmem:[%s2612_s1 + $0x28] sm:$0xff] }
  0x2e   :  { %440 = vmatpush.bf16.xpose.msra.mxu0 %v418_v41  ;;  %1747 = vmatpush.bf16.xpose.msra.mxu3 %v418_v41  ;;  %v629_v41 = vld [vmem:[%s2613_s4 + $0xc8] sm:$0xff] }
  0x32   :  { %154 = vperm.xlu0 %1751, %v96_v46   ;;  %v1701_v46 = vld [vmem:[%s2612_s1 + $0x78] sm:$0xff] }
  0x34   :  { %159 = vperm.xlu1 %1752, %v97_v47   ;;  %224 = vperm.xlu2 %1753, %v110_v51   ;;  %v627_v47 = vld [vmem:[%s2613_s4 + $0xb8] sm:$0xff] }
  0x36   :  { %441 = vmatpush.bf16.xpose.msra.mxu0 %v415_v48  ;;  %1748 = vmatpush.bf16.xpose.msra.mxu3 %v415_v48  ;;  %v624_v48 = vld [vmem:[%s2613_s4 + $0xa0] sm:$0xff] }
  0x3a   :  { %229 = vperm.xlu0 %1751, %v111_v53   ;;  %v622_v53 = vld [vmem:[%s2613_s4 + $0x90] sm:$0xff] }
  0x3c   :  { %144 = vperm.xlu1 %1752, %v94_v54   ;;  %149 = vperm.xlu2 %1753, %v95_v56   ;;  %v1692_v54 = vld [vmem:[%s2612_s1 + $0x30] sm:$0xff] }
  0x3e   :  { %442 = vmatpush.bf16.xpose.msra.mxu0 %v412_v55  ;;  %1749 = vmatpush.bf16.xpose.msra.mxu3 %v412_v55  ;;  %v623_v55 = vld [vmem:[%s2613_s4 + $0x98] sm:$0xff] }
  0x42   :  { %214 = vperm.xlu0 %1751, %v108_v57  }
  0x44   :  { %219 = vperm.xlu1 %1752, %v109_v59   ;;  %134 = vperm.xlu2 %1753, %v92_v60   ;;  %v620_v59 = vld [vmem:[%s2613_s4 + $0x80] sm:$0xff]  ;;  %v621_v60 = vld [vmem:[%s2613_s4 + $0x88] sm:$0xff] }
  0x45   :  { %1509 = vmatmul.msk.bf16.vlgmr.msra.gmra.mxu0 %vm362_vm0, %v1686_v58  ;;  %1522 = vmatmul.msk.bf16.vlgmr.msra.gmra.mxu3 %vm362_vm0, %v1699_v20 }
  0x4a   :  { %139 = vperm.xlu0 %1751, %v93_v61   ;;  %v1190_v61 = vld [vmem:[%s2614_s6] sm:$0xff] }
  0x4c   :  { %204 = vperm.xlu1 %1752, %v106_v62   ;;  %209 = vperm.xlu2 %1753, %v107_v63  }
  0x52   :  { %124 = vperm.xlu0 %1751, %v90_v0   ;;  %v1191_v0 = vld [vmem:[%s2614_s6 + $0x8] sm:$0xff] }
  0x54   :  { %129 = vperm.xlu1 %1752, %v91_v2   ;;  %708 = vperm.xlu2 %1753, %v618_v3   ;;  %v1192_v2 = vld [vmem:[%s2614_s6 + $0x10] sm:$0xff]  ;;  %v1693_v3 = vld [vmem:[%s2612_s1 + $0x38] sm:$0xff] }
  0x55   :  { %1510 = vmatmul.msk.bf16.gmra.mxu0 %vm362_vm0, %v1687_v1  ;;  %1523 = vmatmul.msk.bf16.gmra.mxu3 %vm362_vm0, %v1700_v32 }
  0x5a   :  { %713 = vperm.xlu0 %1751, %v619_v4   ;;  %v1193_v4 = vld [vmem:[%s2614_s6 + $0x18] sm:$0xff] }
  0x5c   :  { %698 = vperm.xlu1 %1752, %v616_v5   ;;  %703 = vperm.xlu2 %1753, %v617_v6  }
  0x5e   :  { %v2057_v33 = vpop.permute.xlu2 %264 }
  0x62   :  { %688 = vperm.xlu0 %1751, %v614_v7   ;;  %v1194_v7 = vld [vmem:[%s2614_s6 + $0x20] sm:$0xff] }
  0x64   :  { %693 = vperm.xlu1 %1752, %v615_v9   ;;  %678 = vperm.xlu2 %1753, %v612_v10   ;;  %v1345_v9 = vld [vmem:[%s2615_s7 + $0x8] sm:$0xff] }
  0x65   :  { %1511 = vmatmul.msk.bf16.gmra.mxu0 %vm362_vm0, %v1688_v8  ;;  %1524 = vmatmul.msk.bf16.gmra.mxu3 %vm362_vm0, %v1701_v46  ;;  %v1344_v8 = vld [vmem:[%s2615_s7] sm:$0xff]  ;;  %v1695_v46 = vld [vmem:[%s2612_s1 + $0x48] sm:$0xff] }
  0x66   :  { %v2082_v42 = vpop.permute.xlu2 %269 }
  0x6a   :  { %683 = vperm.xlu0 %1751, %v613_v11  }
  0x6c   :  { %668 = vperm.xlu1 %1752, %v610_v12   ;;  %673 = vperm.xlu2 %1753, %v611_v13   ;;  %v1195_v13 = vld [vmem:[%s2614_s6 + $0x28] sm:$0xff] }
  0x6e   :  { %v2102_v49 = vpop.permute.xlu2 %254 }
  0x72   :  { %658 = vperm.xlu0 %1751, %v608_v14   ;;  %v1346_v14 = vld [vmem:[%s2615_s7 + $0x10] sm:$0xff] }
  0x74   :  { %663 = vperm.xlu1 %1752, %v609_v16   ;;  %v2012_v17 = vpop.permute.xlu0 %274  ;;  %648 = vperm.xlu2 %1753, %v606_v19   ;;  %v1196_v16 = vld [vmem:[%s2614_s6 + $0x30] sm:$0xff] }
  0x75   :  { %1512 = vmatmul.msk.bf16.gmra.mxu0 %vm362_vm0, %v1689_v15  ;;  %v1694_v15 = vld [vmem:[%s2612_s1 + $0x40] sm:$0xff] }
  0x76   :  { %v2015_v18 = vpop.permute.xlu1 %194  ;;  %v2123_v57 = vpop.permute.xlu2 %179 }
  0x7a   :  { %653 = vperm.xlu0 %1751, %v607_v21  }
  0x7c   :  { %638 = vperm.xlu1 %1752, %v604_v22   ;;  %v2030_v23 = vpop.permute.xlu0 %279  ;;  %643 = vperm.xlu2 %1753, %v605_v25   ;;  %v1347_v22 = vld [vmem:[%s2615_s7 + $0x18] sm:$0xff] }
  0x7e   :  { %v2032_v24 = vpop.permute.xlu1 %199  ;;  %v2143_v1 = vpop.permute.xlu2 %164 }
  0x82   :  { %788 = vperm.xlu0 %1751, %v634_v26   ;;  %v1197_v26 = vld [vmem:[%s2614_s6 + $0x38] sm:$0xff] }
  0x84   :  { %793 = vperm.xlu1 %1752, %v635_v28   ;;  %v2046_v29 = vpop.permute.xlu0 %184  ;;  %778 = vperm.xlu2 %1753, %v632_v31   ;;  %v1348_v28 = vld [vmem:[%s2615_s7 + $0x20] sm:$0xff] }
  0x85   :  { %1513 = vmatmul.msk.bf16.gmra.mxu0 %vm362_vm0, %v1690_v27 }
  0x86   :  { %v2049_v30 = vpop.permute.xlu1 %189  ;;  %v2168_v10 = vpop.permute.xlu2 %239 }
  0x8a   :  { %783 = vperm.xlu0 %1751, %v633_v34  }
  0x8c   :  { %768 = vperm.xlu1 %1752, %v630_v35   ;;  %v2066_v36 = vpop.permute.xlu0 %259  ;;  %773 = vperm.xlu2 %1753, %v631_v38  }
  0x8e   :  { %v2068_v37 = vpop.permute.xlu1 %174  ;;  %v2184_v20 = vpop.permute.xlu2 %224 }
  0x92   :  { %758 = vperm.xlu0 %1751, %v628_v39   ;;  %v1349_v39 = vld [vmem:[%s2615_s7 + $0x28] sm:$0xff] }
  0x94   :  { %763 = vperm.xlu1 %1752, %v629_v41   ;;  %v2084_v43 = vpop.permute.xlu0 %244  ;;  %748 = vperm.xlu2 %1753, %v626_v45   ;;  %v1350_v45 = vld [vmem:[%s2615_s7 + $0x30] sm:$0xff] }
  0x95   :  { %1514 = vmatmul.msk.bf16.gmra.mxu0 %vm362_vm0, %v1691_v40  ;;  %v14_v40 = vstv %s2616_s8 }
  0x96   :  { %v2087_v44 = vpop.permute.xlu1 %249  ;;  %v150_v38 = vpop.permute.xlu2 %149  ;;  %15 = vst [vmem:[#allocation2] sm:$0x1] %v14_v40 }
  0x9a   :  { %753 = vperm.xlu0 %1751, %v627_v47   ;;  %v1351_v47 = vld [vmem:[%s2615_s7 + $0x38] sm:$0xff] }
  0x9c   :  { %738 = vperm.xlu1 %1752, %v624_v48   ;;  %v2104_v50 = vpop.permute.xlu0 %169  ;;  %743 = vperm.xlu2 %1753, %v625_v52  }
  0x9d   :  { %v1413_v52 = vld [vmem:[#allocation2] sm:$0x1] }
  0x9e   :  { %v2106_v51 = vpop.permute.xlu1 %234 }
  0xa2   :  { %728 = vperm.xlu0 %1751, %v622_v53   ;;  %v135_v53 = vpop.permute.xlu2 %134 }
  0xa4   :  { %733 = vperm.xlu1 %1752, %v623_v55   ;;  %v2120_v56 = vpop.permute.xlu0 %154  ;;  %718 = vperm.xlu2 %1753, %v620_v59  }
  0xa5   :  { %1515 = vmatmul.msk.bf16.gmra.mxu0 %vm362_vm0, %v1692_v54 }
  0xa6   :  { %v2125_v58 = vpop.permute.xlu1 %159 }
  0xaa   :  { %723 = vperm.xlu0 %1751, %v621_v60  }
  0xac   :  { %1200 = vperm.xlu1 %1752, %v1190_v61   ;;  %v2136_v62 = vpop.permute.xlu0 %229  ;;  %1205 = vperm.xlu2 %1753, %v1191_v0  }
  0xae   :  { %v2138_v63 = vpop.permute.xlu1 %144 }
  0xb2   :  { %1210 = vperm.xlu0 %1751, %v1192_v2   ;;  %v1696_v2 = vld [vmem:[%s2612_s1 + $0x50] sm:$0xff] }
  0xb4   :  { %1215 = vperm.xlu1 %1752, %v1193_v4   ;;  %v2154_v5 = vpop.permute.xlu0 %214  ;;  %1220 = vperm.xlu2 %1753, %v1194_v7  }
  0xb5   :  { %1516 = vmatmul.msk.bf16.gmra.mxu0 %vm362_vm0, %v1693_v3 }
  0xb6   :  { %v2157_v6 = vpop.permute.xlu1 %219 }
  0xba   :  { %1354 = vperm.xlu0 %1751, %v1344_v8  }
  0xbc   :  { %1359 = vperm.xlu1 %1752, %v1345_v9   ;;  %v140_v11 = vpop.permute.xlu0 %139  ;;  %1225 = vperm.xlu2 %1753, %v1195_v13  }
  0xbe   :  { %v2170_v12 = vpop.permute.xlu1 %204 }
  0xc2   :  { %v444_v19 = vpop.f32.mrf.mxu0  ;;  %1364 = vperm.xlu0 %1751, %v1346_v14  }
  0xc4   :  { %1230 = vperm.xlu1 %1752, %v1196_v16   ;;  %v125_v21 = vpop.permute.xlu0 %124  ;;  %1369 = vperm.xlu2 %1753, %v1347_v22  }
  0xc5   :  { %1517 = vmatmul.msk.bf16.gmra.mxu0 %vm362_vm0, %v1694_v15  ;;  %v445_v27 = vadd.f32 %v444_v19, %v125_v21 }
  0xc6   :  { %v130_v25 = vpop.permute.xlu1 %129 }
  0xc7   :  { %v524_v34 = vmax.f32 %v445_v27, 0.0  ;;  %v1698_v27 = vld [vmem:[%s2612_s1 + $0x60] sm:$0xff] }
  0xca   :  { %v446_v31 = vpop.f32.mrf.mxu0  ;;  %1235 = vperm.xlu0 %1751, %v1197_v26  }
  0xcb   :  { %v447_v32 = vadd.f32 %v446_v31, %v130_v25  ;;  %v509_v25 = vpop.f32.mrf.mxu3 }
  0xcc   :  { %1374 = vperm.xlu1 %1752, %v1348_v28   ;;  %1379 = vperm.xlu2 %1753, %v1349_v39  }
  0xcd   :  { %v525_v35 = vmax.f32 %v447_v32, 0.0 }
  0xcf   :  { %v2202_v41 = vpack.c.bf16 %v525_v35, %v524_v34 }
  0xd2   :  { %v449_v48 = vpop.f32.mrf.mxu0  ;;  %1384 = vperm.xlu0 %1751, %v1350_v45  }
  0xd3   :  { %v450_v54 = vadd.f32 %v449_v48, %v135_v53  ;;  %v511_v31 = vpop.f32.mrf.mxu3 }
  0xd4   :  { %1389 = vperm.xlu1 %1752, %v1351_v47   ;;  %1416 = vperm.xlu2 %1753, %v1413_v52  }
  0xd5   :  { %1518 = vmatmul.msk.bf16.gmra.mxu0 %vm362_vm0, %v1695_v46  ;;  %v526_v60 = vmax.f32 %v450_v54, 0.0  ;;  %v510_v54 = vadd.f32 %v509_v25, %v2102_v49 }
  0xda   :  { %v451_v55 = vpop.f32.mrf.mxu0 }
  0xdb   :  { %v452_v59 = vadd.f32 %v451_v55, %v140_v11  ;;  %v1697_v11 = vld [vmem:[%s2612_s1 + $0x58] sm:$0xff]  ;;  %v514_v34 = vpop.f32.mrf.mxu3 }
  0xdc   :  { %v515_v47 = vadd.f32 %v514_v34, %v2057_v33  ;;  %v210_v34 = vpop.permute.xlu2 %209 }
  0xdd   :  { %v527_v61 = vmax.f32 %v452_v59, 0.0  ;;  %v512_v59 = vadd.f32 %v511_v31, %v2066_v36 }
  0xdf   :  { %v2214_v0 = vpack.c.bf16 %v527_v61, %v526_v60  ;;  %v552_v60 = vmax.f32 %v515_v47, 0.0  ;;  %v1543_v47 = vld [vmem:[%s2617_s3 + $0x20] sm:$0xf] }
  0xe2   :  { %v454_v3 = vpop.f32.mrf.mxu0 }
  0xe3   :  { %v455_v4 = vadd.f32 %v454_v3, %v2138_v63  ;;  %v550_v3 = vmax.f32 %v510_v54, 0.0 }
  0xe5   :  { %1519 = vmatmul.msk.bf16.gmra.mxu0 %vm362_vm0, %v1696_v2  ;;  %v528_v9 = vmax.f32 %v455_v4, 0.0 }
  0xea   :  { %v456_v7 = vpop.f32.mrf.mxu0 }
  0xeb   :  { %v457_v8 = vadd.f32 %v456_v7, %v150_v38 }
  0xed   :  { %v529_v13 = vmax.f32 %v457_v8, 0.0 }
  0xef   :  { %v2221_v14 = vpack.c.bf16 %v529_v13, %v528_v9 }
  0xf2   :  { %v459_v15 = vpop.f32.mrf.mxu0 }
  0xf3   :  { %v460_v16 = vadd.f32 %v459_v15, %v2120_v56  ;;  %v516_v56 = vpop.f32.mrf.mxu3 }
  0xf4   :  { %v517_v48 = vadd.f32 %v516_v56, %v2082_v42 }
  0xf5   :  { %1520 = vmatmul.msk.bf16.gmra.mxu0 %vm362_vm0, %v1697_v11  ;;  %v530_v22 = vmax.f32 %v460_v16, 0.0 }
  0xf6   :  { %v553_v61 = vmax.f32 %v517_v48, 0.0 }
  0xf8   :  { %v602_v4 = vpack.c.bf16 %v553_v61, %v552_v60 }
  0xfa   :  { %v461_v19 = vpop.f32.mrf.mxu0 }
  0xfb   :  { %v462_v21 = vadd.f32 %v461_v19, %v2125_v58  ;;  %v519_v39 = vpop.f32.mrf.mxu3 }
  0xfc   :  { %v520_v40 = vadd.f32 %v519_v39, %v2012_v17  ;;  %v551_v17 = vmax.f32 %v512_v59, 0.0  ;;  %v1709_v59 = vld [vmem:[%s2617_s3 + $0x34] sm:$0xf0] }
  0xfd   :  { %v531_v63 = vmax.f32 %v462_v21, 0.0 }
  0xfe   :  { %v554_v52 = vmax.f32 %v520_v40, 0.0  ;;  %v601_v7 = vpack.c.bf16 %v551_v17, %v550_v3 }
  0xff   :  { %v2229_v26 = vpack.c.bf16 %v531_v63, %v530_v22 }
 0x102   :  { %v464_v28 = vpop.f32.mrf.mxu0 }
 0x103   :  { %v521_v45 = vpop.f32.mrf.mxu3 }
 0x104   :  { %v522_v46 = vadd.f32 %v521_v45, %v2030_v23 }
 0x105   :  { %1521 = vmatmul.msk.bf16.gmra.mxu0 %vm362_vm0, %v1698_v27 }
 0x106   :  { %v555_v53 = vmax.f32 %v522_v46, 0.0 }
 0x108   :  { %v603_v2 = vpack.c.bf16 %v555_v53, %v554_v52 }
 0x10a   :  { %v466_v32 = vpop.f32.mrf.mxu0  ;;  %1045 = vmatpush.bf16.msra.mxu2 %v603_v2 }
 0x10e   :  { %1046 = vmatpush.bf16.msra.mxu2 %v602_v4 }
 0x112   :  { %v469_v35 = vpop.f32.mrf.mxu0  ;;  %1047 = vmatpush.bf16.msra.mxu2 %v601_v7 }
 0x113   :  { %v470_v19 = vadd.f32 %v469_v35, %v2068_v37 }
 0x11a   :  { %v471_v38 = vpop.f32.mrf.mxu0 }
 0x11b   :  { %v472_v11 = vadd.f32 %v471_v38, %v2123_v57 }
 0x11d   :  { %v535_v63 = vmax.f32 %v472_v11, 0.0 }
 0x122   :  { %v474_v58 = vpop.f32.mrf.mxu0 }
 0x123   :  { %v475_v36 = vadd.f32 %v474_v58, %v2046_v29 }
 0x125   :  { %v536_v21 = vmax.f32 %v475_v36, 0.0 }
 0x12a   :  { %v476_v55 = vpop.f32.mrf.mxu0 }
 0x12b   :  { %v477_v8 = vadd.f32 %v476_v55, %v2049_v30  ;;  %v465_v30 = vadd.f32 %v464_v28, %v2143_v1  ;;  %v1527_v1 = vld [vmem:[%s2617_s3] sm:$0xf]  ;;  %v1551_v55 = vld [vmem:[%s2617_s3 + $0x30] sm:$0xf] }
 0x12c   :  { %v1552_v3 = vor.u32 %v1709_v59, %v1551_v55  ;;  %v2366_v55 = vpop.permute.xlu2 %708 }
 0x12d   :  { %v537_v15 = vmax.f32 %v477_v8, 0.0  ;;  %v532_v31 = vmax.f32 %v465_v30, 0.0 }
 0x12f   :  { %v594_v25 = vpack.c.bf16 %v537_v15, %v536_v21  ;;  %v1567_v21 = vld [vmem:[%s2617_s3 + $0x50] sm:$0xf] }
 0x132   :  { %v479_v23 = vpop.f32.mrf.mxu0 }
 0x133   :  { %v480_v33 = vadd.f32 %v479_v23, %v2015_v18  ;;  %v467_v18 = vadd.f32 %v466_v32, %v2104_v50 }
 0x135   :  { %v538_v9 = vmax.f32 %v480_v33, 0.0  ;;  %v533_v29 = vmax.f32 %v467_v18, 0.0 }
 0x137   :  { %v592_v35 = vpack.c.bf16 %v533_v29, %v532_v31  ;;  %v1715_v29 = vld [vmem:[%s2617_s3 + $0x64] sm:$0xf0]  ;;  %v1706_v31 = vld [vmem:[%s2617_s3 + $0x24] sm:$0xf] }
 0x13a   :  { %v481_v42 = vpop.f32.mrf.mxu0 }
 0x13b   :  { %v482_v49 = vadd.f32 %v481_v42, %v2032_v24  ;;  %v534_v24 = vmax.f32 %v470_v19, 0.0 }
 0x13d   :  { %v539_v13 = vmax.f32 %v482_v49, 0.0  ;;  %v593_v27 = vpack.c.bf16 %v535_v63, %v534_v24  ;;  %v1704_v63 = vld [vmem:[%s2617_s3 + $0x14] sm:$0xf]  ;;  %v1575_v24 = vld [vmem:[%s2617_s3 + $0x60] sm:$0xf] }
 0x13f   :  { %v595_v16 = vpack.c.bf16 %v539_v13, %v538_v9 }
 0x141   :  { %956 = vmatpush.bf16.msra.mxu1 %v595_v16  ;;  %v1529_v16 = vld [vmem:[%s2617_s3 + $0x8] sm:$0xf0] }
 0x142   :  { %v484_v22 = vpop.f32.mrf.mxu0 }
 0x143   :  { %v485_v57 = vadd.f32 %v484_v22, %v2170_v12  ;;  %v1703_v12 = vld [vmem:[%s2617_s3 + $0x4] sm:$0xf0]  ;;  %v1713_v22 = vld [vmem:[%s2617_s3 + $0x54] sm:$0xf0] }
 0x144   :  { %v1528_v58 = vor.u32 %v1703_v12, %v1527_v1  ;;  %v1568_v18 = vor.u32 %v1713_v22, %v1567_v21  ;;  %v1719_v1 = vld [vmem:[%s2617_s3 + $0x84] sm:$0xf0] }
 0x145   :  { %957 = vmatpush.bf16.msra.mxu1 %v594_v25  ;;  %v540_v38 = vmax.f32 %v485_v57, 0.0  ;;  %v1537_v25 = vld [vmem:[%s2617_s3 + $0x18] sm:$0xf0]  ;;  %v1545_v57 = vld [vmem:[%s2617_s3 + $0x28] sm:$0xf0] }
 0x146   :  { %v1540_v30 = vor.u32 %v1704_v63, %v1537_v25 }
 0x149   :  { %958 = vmatpush.bf16.msra.mxu1 %v593_v27  ;;  %v1576_v27 = vor.u32 %v1715_v29, %v1575_v24  ;;  %v1631_v29 = vld [vmem:[%s2617_s3 + $0xd0] sm:$0xf] }
 0x14a   :  { %v486_v56 = vpop.f32.mrf.mxu0 }
 0x14b   :  { %v487_v37 = vadd.f32 %v486_v56, %v210_v34  ;;  %v1548_v34 = vor.u32 %v1706_v31, %v1545_v57  ;;  %v1583_v56 = vld [vmem:[%s2617_s3 + $0x70] sm:$0xf] }
 0x14d   :  { %v541_v39 = vmax.f32 %v487_v37, 0.0  ;;  %959 = vmatpush.bf16.msra.mxu1 %v592_v35  ;;  %v1717_v37 = vld [vmem:[%s2617_s3 + $0x74] sm:$0xf0] }
 0x14e   :  { %v1584_v35 = vor.u32 %v1717_v37, %v1583_v56  ;;  %v1720_v56 = vld [vmem:[%s2617_s3 + $0x94] sm:$0xf]  ;;  %v1601_v37 = vld [vmem:[%s2617_s3 + $0x98] sm:$0xf0] }
 0x14f   :  { %v596_v50 = vpack.c.bf16 %v541_v39, %v540_v38  ;;  %v1708_v38 = vld [vmem:[%s2617_s3 + $0x34] sm:$0xf]  ;;  %v1553_v39 = vld [vmem:[%s2617_s3 + $0x38] sm:$0xf0] }
 0x151   :  { %960 = vmatpush.bf16.msra.mxu1 %v2229_v26 }
 0x152   :  { %v489_v32 = vpop.f32.mrf.mxu0 }
 0x155   :  { %961 = vmatpush.bf16.msra.mxu1 %v2221_v14  ;;  %v1535_v14 = vld [vmem:[%s2617_s3 + $0x10] sm:$0xf] }
 0x159   :  { %962 = vmatpush.bf16.msra.mxu1 %v2214_v0  ;;  %v1705_v0 = vld [vmem:[%s2617_s3 + $0x14] sm:$0xf0] }
 0x15a   :  { %v491_v28 = vpop.f32.mrf.mxu0  ;;  %v1536_v45 = vor.u32 %v1705_v0, %v1535_v14  ;;  %v1599_v0 = vld [vmem:[%s2617_s3 + $0x90] sm:$0xf] }
 0x15b   :  { %v492_v49 = vadd.f32 %v491_v28, %v2157_v6  ;;  %v1710_v28 = vld [vmem:[%s2617_s3 + $0x44] sm:$0xf] }
 0x15d   :  { %963 = vmatpush.bf16.msra.mxu1 %v2202_v41  ;;  %v1707_v41 = vld [vmem:[%s2617_s3 + $0x24] sm:$0xf0] }
 0x15e   :  { %v1544_v52 = vor.u32 %v1707_v41, %v1543_v47  ;;  %v1569_v47 = vld [vmem:[%s2617_s3 + $0x58] sm:$0xf0] }
 0x160   :  { %964 = vmatmul.bf16.vlgmr.msra.gmra.mxu1 %v1528_v58  ;;  %v1561_v58 = vld [vmem:[%s2617_s3 + $0x48] sm:$0xf0] }
 0x162   :  { %v494_v40 = vpop.f32.mrf.mxu0 }
 0x163   :  { %v495_v42 = vadd.f32 %v494_v40, %v2184_v20  ;;  %v1711_v20 = vld [vmem:[%s2617_s3 + $0x44] sm:$0xf0]  ;;  %v1564_v40 = vor.u32 %v1710_v28, %v1561_v58 }
 0x165   :  { %v544_v9 = vmax.f32 %v495_v42, 0.0 }
 0x16a   :  { %v496_v26 = vpop.f32.mrf.mxu0 }
 0x170   :  { %969 = vmatmul.bf16.gmra.mxu1 %v1536_v45 }
 0x172   :  { %v499_v46 = vpop.f32.mrf.mxu0 }
 0x173   :  { %v500_v17 = vadd.f32 %v499_v46, %v2106_v51  ;;  %v543_v51 = vmax.f32 %v492_v49, 0.0  ;;  %v1712_v46 = vld [vmem:[%s2617_s3 + $0x54] sm:$0xf]  ;;  %v1585_v49 = vld [vmem:[%s2617_s3 + $0x78] sm:$0xf0] }
 0x175   :  { %v546_v8 = vmax.f32 %v500_v17, 0.0 }
 0x17a   :  { %v501_v48 = vpop.f32.mrf.mxu0 }
 0x17b   :  { %v502_v61 = vadd.f32 %v501_v48, %v2168_v10  ;;  %v1572_v48 = vor.u32 %v1712_v46, %v1569_v47 }
 0x17d   :  { %v547_v7 = vmax.f32 %v502_v61, 0.0  ;;  %v1714_v61 = vld [vmem:[%s2617_s3 + $0x64] sm:$0xf] }
 0x17f   :  { %v599_v10 = vpack.c.bf16 %v547_v7, %v546_v8  ;;  %v1725_v7 = vld [vmem:[%s2617_s3 + $0xb4] sm:$0xf0]  ;;  %v1716_v8 = vld [vmem:[%s2617_s3 + $0x74] sm:$0xf] }
 0x180   :  { %974 = vmatmul.bf16.gmra.mxu1 %v1544_v52 }
 0x182   :  { %v504_v53 = vpop.f32.mrf.mxu0 }
 0x183   :  { %v505_v54 = vadd.f32 %v504_v53, %v2084_v43  ;;  %v497_v43 = vadd.f32 %v496_v26, %v2136_v62  ;;  %v1559_v62 = vld [vmem:[%s2617_s3 + $0x40] sm:$0xf]  ;;  %v1721_v26 = vld [vmem:[%s2617_s3 + $0x94] sm:$0xf0] }
 0x184   :  { %v1560_v6 = vor.u32 %v1711_v20, %v1559_v62  ;;  %v1600_v45 = vor.u32 %v1721_v26, %v1599_v0  ;;  %v1607_v53 = vld [vmem:[%s2617_s3 + $0xa0] sm:$0xf]  ;;  %v1727_v62 = vld [vmem:[%s2617_s3 + $0xc4] sm:$0xf0] }
 0x185   :  { %v548_v4 = vmax.f32 %v505_v54, 0.0  ;;  %v545_v36 = vmax.f32 %v497_v43, 0.0  ;;  %v1723_v54 = vld [vmem:[%s2617_s3 + $0xa4] sm:$0xf0]  ;;  %v1615_v43 = vld [vmem:[%s2617_s3 + $0xb0] sm:$0xf] }
 0x186   :  { %v1608_v59 = vor.u32 %v1723_v54, %v1607_v53  ;;  %v1639_v26 = vld [vmem:[%s2617_s3 + $0xe0] sm:$0xf] }
 0x187   :  { %v598_v13 = vpack.c.bf16 %v545_v36, %v544_v9  ;;  %v2398_v9 = vpop.permute.xlu0 %713 }
 0x18a   :  { %v506_v60 = vpop.f32.mrf.mxu0 }
 0x18b   :  { %v507_v2 = vadd.f32 %v506_v60, %v2087_v44  ;;  %v490_v44 = vadd.f32 %v489_v32, %v2154_v5  ;;  %v1702_v5 = vld [vmem:[%s2617_s3 + $0x4] sm:$0xf]  ;;  %v1591_v32 = vld [vmem:[%s2617_s3 + $0x80] sm:$0xf]  ;;  %v2368_v60 = vpop.permute.xlu1 %698 }
 0x18c   :  { %v1532_v19 = vor.u32 %v1702_v5, %v1529_v16  ;;  %v1592_v12 = vor.u32 %v1719_v1, %v1591_v32  ;;  %v1593_v5 = vld [vmem:[%s2617_s3 + $0x88] sm:$0xf0] }
 0x18d   :  { %v549_v23 = vmax.f32 %v507_v2, 0.0  ;;  %v542_v11 = vmax.f32 %v490_v44, 0.0  ;;  %v1577_v2 = vld [vmem:[%s2617_s3 + $0x68] sm:$0xf0] }
 0x18f   :  { %v600_v33 = vpack.c.bf16 %v549_v23, %v548_v4  ;;  %v597_v15 = vpack.c.bf16 %v543_v51, %v542_v11  ;;  %v2376_v4 = vpop.permute.xlu2 %703  ;;  %v1623_v11 = vld [vmem:[%s2617_s3 + $0xc0] sm:$0xf]  ;;  %v2416_v16 = vpop.permute.xlu0 %688 }
 0x190   :  { %979 = vmatmul.bf16.gmra.mxu1 %v1552_v3  ;;  %v1580_v3 = vor.u32 %v1714_v61, %v1577_v2 }
 0x191   :  { %1048 = vmatpush.bf16.msra.mxu2 %v600_v33  ;;  %v1616_v33 = vor.u32 %v1725_v7, %v1615_v43 }
 0x193   :  { %v2378_v23 = vpop.permute.xlu1 %693 }
 0x195   :  { %1049 = vmatpush.bf16.msra.mxu2 %v599_v10  ;;  %v1588_v10 = vor.u32 %v1716_v8, %v1585_v49 }
 0x197   :  { %v2394_v36 = vpop.permute.xlu2 %678  ;;  %v2420_v24 = vpop.permute.xlu0 %683 }
 0x199   :  { %1050 = vmatpush.bf16.msra.mxu2 %v598_v13 }
 0x19b   :  { %v2396_v44 = vpop.permute.xlu1 %668 }
 0x19d   :  { %1051 = vmatpush.bf16.msra.mxu2 %v597_v15  ;;  %v1624_v15 = vor.u32 %v1727_v62, %v1623_v11  ;;  %v1724_v62 = vld [vmem:[%s2617_s3 + $0xb4] sm:$0xf] }
 0x19f   :  { %v2402_v13 = vpop.permute.xlu2 %673 }
 0x1a0   :  { %984 = vmatmul.bf16.gmra.mxu1 %v1560_v6  ;;  %v1718_v6 = vld [vmem:[%s2617_s3 + $0x84] sm:$0xf] }
 0x1a1   :  { %1052 = vmatpush.bf16.msra.mxu2 %v596_v50  ;;  %v1556_v50 = vor.u32 %v1708_v38, %v1553_v39 }
 0x1a3   :  { %v664_v20 = vpop.permute.xlu1 %663 }
 0x1a4   :  { %1053 = vmatmul.bf16.vlgmr.msra.gmra.mxu2 %v1532_v19  ;;  %v1596_v19 = vor.u32 %v1718_v6, %v1593_v5 }
 0x1a7   :  { %v649_v22 = vpop.permute.xlu2 %648 }
 0x1b0   :  { %989 = vmatmul.bf16.gmra.mxu1 %v1568_v18  ;;  %v639_v18 = vpop.permute.xlu1 %638 }
 0x1b4   :  { %1058 = vmatmul.bf16.gmra.mxu2 %v1540_v30 }
 0x1c0   :  { %994 = vmatmul.bf16.gmra.mxu1 %v1576_v27  ;;  %v1729_v27 = vld [vmem:[%s2617_s3 + $0xd4] sm:$0xf0] }
 0x1c1   :  { %v1632_v57 = vor.u32 %v1729_v27, %v1631_v29 }
 0x1c4   :  { %1063 = vmatmul.bf16.gmra.mxu2 %v1548_v34  ;;  %v644_v34 = vpop.permute.xlu2 %643 }
 0x1d0   :  { %999 = vmatmul.bf16.gmra.mxu1 %v1584_v35 }
 0x1d4   :  { %1068 = vmatmul.bf16.gmra.mxu2 %v1556_v50  ;;  %v1604_v50 = vor.u32 %v1720_v56, %v1601_v37 }
 0x1dd   :  { %v965_v14 = vpop.f32.mrf.mxu1 }
 0x1de   :  { %v966_v63 = vadd.f32 %v965_v14, %v639_v18 }
 0x1e0   :  { %1004 = vmatmul.bf16.gmra.mxu1 %v1592_v12  ;;  %v659_v12 = vpop.permute.xlu0 %658 }
 0x1e4   :  { %1073 = vmatmul.bf16.gmra.mxu2 %v1564_v40 }
 0x1e5   :  { %v967_v41 = vpop.f32.mrf.mxu1 }
 0x1e6   :  { %v968_v35 = vadd.f32 %v967_v41, %v644_v34  ;;  %v1722_v41 = vld [vmem:[%s2617_s3 + $0xa4] sm:$0xf] }
 0x1e8   :  { %v654_v47 = vpop.permute.xlu0 %653 }
 0x1ed   :  { %v2358_v52 = vpop.f32.mrf.mxu1 }
 0x1ee   :  { %v971_v40 = vadd.f32 %v2358_v52, %v649_v22 }
 0x1f0   :  { %1009 = vmatmul.bf16.gmra.mxu1 %v1600_v45  ;;  %v1731_v45 = vld [vmem:[%s2617_s3 + $0xe4] sm:$0xf0] }
 0x1f1   :  { %v1640_v46 = vor.u32 %v1731_v45, %v1639_v26  ;;  %v2491_v26 = vpop.permute.xlu0 %788  ;;  %v1730_v45 = vld [vmem:[%s2617_s3 + $0xe4] sm:$0xf] }
 0x1f4   :  { %1078 = vmatmul.bf16.gmra.mxu2 %v1572_v48  ;;  %v1609_v48 = vld [vmem:[%s2617_s3 + $0xa8] sm:$0xf0] }
 0x1f5   :  { %v972_v17 = vpop.f32.mrf.mxu1  ;;  %v1612_v61 = vor.u32 %v1722_v41, %v1609_v48 }
 0x1f6   :  { %v973_v52 = vadd.f32 %v972_v17, %v654_v47  ;;  %v1647_v17 = vld [vmem:[%s2617_s3 + $0xf0] sm:$0xf] }
 0x1f9   :  { %v2501_v48 = vpop.permute.xlu0 %783 }
 0x1fd   :  { %v2386_v42 = vpop.f32.mrf.mxu1 }
 0x1fe   :  { %v976_v7 = vadd.f32 %v2386_v42, %v659_v12  ;;  %v1617_v42 = vld [vmem:[%s2617_s3 + $0xb8] sm:$0xf0]  ;;  %v1728_v12 = vld [vmem:[%s2617_s3 + $0xd4] sm:$0xf] }
 0x200   :  { %1014 = vmatmul.bf16.gmra.mxu1 %v1608_v59 }
 0x204   :  { %1083 = vmatmul.bf16.gmra.mxu2 %v1580_v3 }
 0x205   :  { %v2400_v51 = vpop.f32.mrf.mxu1 }
 0x20d   :  { %v2418_v21 = vpop.f32.mrf.mxu1 }
 0x210   :  { %1019 = vmatmul.bf16.gmra.mxu1 %v1616_v33 }
 0x214   :  { %1088 = vmatmul.bf16.gmra.mxu2 %v1588_v10  ;;  %v1733_v10 = vld [vmem:[%s2617_s3 + $0xf4] sm:$0xf0] }
 0x215   :  { %v982_v31 = vpop.f32.mrf.mxu1  ;;  %v1648_v11 = vor.u32 %v1733_v10, %v1647_v17  ;;  %v2515_v10 = vpop.permute.xlu1 %793 }
 0x216   :  { %v983_v34 = vadd.f32 %v982_v31, %v2402_v13  ;;  %v1633_v13 = vld [vmem:[%s2617_s3 + $0xd8] sm:$0xf0] }
 0x21d   :  { %v985_v58 = vpop.f32.mrf.mxu1 }
 0x220   :  { %1024 = vmatmul.bf16.gmra.mxu1 %v1624_v15  ;;  %v978_v15 = vadd.f32 %v2400_v51, %v664_v20  ;;  %v1726_v51 = vld [vmem:[%s2617_s3 + $0xc4] sm:$0xf]  ;;  %v1625_v20 = vld [vmem:[%s2617_s3 + $0xc8] sm:$0xf0] }
 0x224   :  { %1093 = vmatmul.bf16.gmra.mxu2 %v1596_v19  ;;  %v1620_v19 = vor.u32 %v1724_v62, %v1617_v42 }
 0x225   :  { %v2449_v53 = vpop.f32.mrf.mxu1 }
 0x227   :  { %v1054_v25 = vpop.f32.mrf.mxu2 }
 0x228   :  { %v1055_v30 = vadd.f32 %v1054_v25, %v966_v63 }
 0x22a   :  { %v1134_v32 = vmax.f32 %v1055_v30, 0.0  ;;  %v981_v30 = vadd.f32 %v2418_v21, %v2396_v44  ;;  %v986_v21 = vadd.f32 %v985_v58, %v2394_v36  ;;  %v2493_v58 = vpop.permute.xlu2 %778 }
 0x22d   :  { %v2454_v49 = vpop.f32.mrf.mxu1 }
 0x22f   :  { %v1056_v38 = vpop.f32.mrf.mxu2 }
 0x230   :  { %v1057_v39 = vadd.f32 %v1056_v38, %v968_v35  ;;  %1029 = vmatmul.bf16.gmra.mxu1 %v1632_v57  ;;  %v1628_v35 = vor.u32 %v1726_v51, %v1625_v20 }
 0x232   :  { %v1135_v1 = vmax.f32 %v1057_v39, 0.0 }
 0x234   :  { %1098 = vmatmul.bf16.gmra.mxu2 %v1604_v50  ;;  %v2434_v28 = vpack.c.bf16 %v1135_v1, %v1134_v32 }
 0x235   :  { %v992_v63 = vpop.f32.mrf.mxu1 }
 0x236   :  { %v993_v20 = vadd.f32 %v992_v63, %v2378_v23 }
 0x237   :  { %v1059_v14 = vpop.f32.mrf.mxu2 }
 0x238   :  { %v1060_v0 = vadd.f32 %v1059_v14, %v971_v40  ;;  %v1636_v40 = vor.u32 %v1728_v12, %v1633_v13 }
 0x23a   :  { %v1136_v2 = vmax.f32 %v1060_v0, 0.0 }
 0x23d   :  { %v995_v57 = vpop.f32.mrf.mxu1 }
 0x23f   :  { %v1061_v54 = vpop.f32.mrf.mxu2 }
 0x240   :  { %v1062_v59 = vadd.f32 %v1061_v54, %v973_v52  ;;  %1034 = vmatmul.bf16.gmra.mxu1 %v1640_v46  ;;  %v1641_v46 = vld [vmem:[%s2617_s3 + $0xe8] sm:$0xf0]  ;;  %v2503_v54 = vpop.permute.xlu2 %773 }
 0x241   :  { %v1644_v41 = vor.u32 %v1730_v45, %v1641_v46 }
 0x242   :  { %v1137_v3 = vmax.f32 %v1062_v59, 0.0 }
 0x244   :  { %1103 = vmatmul.bf16.gmra.mxu2 %v1612_v61  ;;  %v2451_v43 = vpack.c.bf16 %v1137_v3, %v1136_v2  ;;  %v1732_v61 = vld [vmem:[%s2617_s3 + $0xf4] sm:$0xf]  ;;  %v1649_v2 = vld [vmem:[%s2617_s3 + $0xf8] sm:$0xf0]  ;;  %v2511_v3 = vpop.permute.xlu0 %758 }
 0x245   :  { %v997_v50 = vpop.f32.mrf.mxu1 }
 0x247   :  { %v1064_v33 = vpop.f32.mrf.mxu2 }
 0x248   :  { %v1065_v8 = vadd.f32 %v1064_v33, %v976_v7  ;;  %v2513_v17 = vpop.permute.xlu2 %748 }
 0x24a   :  { %v1138_v22 = vmax.f32 %v1065_v8, 0.0  ;;  %v1652_v8 = vor.u32 %v1732_v61, %v1649_v2 }
 0x24c   :  { %v2517_v62 = vpop.permute.xlu0 %753 }
 0x24d   :  { %v1000_v14 = vpop.f32.mrf.mxu1 }
 0x24f   :  { %v1066_v6 = vpop.f32.mrf.mxu2 }
 0x250   :  { %v1067_v5 = vadd.f32 %v1066_v6, %v978_v15  ;;  %1039 = vmatmul.bf16.gmra.mxu1 %v1648_v11  ;;  %v2519_v15 = vpop.permute.xlu2 %743  ;;  %v1001_v6 = vadd.f32 %v1000_v14, %v2366_v55  ;;  %v991_v55 = vadd.f32 %v2454_v49, %v2416_v16 }
 0x252   :  { %v1139_v18 = vmax.f32 %v1067_v5, 0.0  ;;  %v998_v5 = vadd.f32 %v997_v50, %v2376_v4  ;;  %v988_v50 = vadd.f32 %v2449_v53, %v2420_v24 }
 0x254   :  { %1108 = vmatmul.bf16.gmra.mxu2 %v1620_v19  ;;  %v2469_v25 = vpack.c.bf16 %v1139_v18, %v1138_v22  ;;  %v2524_v18 = vpop.permute.xlu1 %768 }
 0x255   :  { %v1002_v36 = vpop.f32.mrf.mxu1 }
 0x256   :  { %v1003_v19 = vadd.f32 %v1002_v36, %v2398_v9 }
 0x257   :  { %v1069_v29 = vpop.f32.mrf.mxu2 }
 0x258   :  { %v1070_v27 = vadd.f32 %v1069_v29, %v981_v30  ;;  %v996_v29 = vadd.f32 %v995_v57, %v2368_v60 }
 0x25a   :  { %v1140_v38 = vmax.f32 %v1070_v27, 0.0 }
 0x25c   :  { %v2532_v14 = vpop.permute.xlu1 %763 }
 0x25d   :  { %v1005_v52 = vpop.f32.mrf.mxu1 }
 0x25f   :  { %v1071_v56 = vpop.f32.mrf.mxu2 }
 0x260   :  { %v1072_v37 = vadd.f32 %v1071_v56, %v983_v34 }
 0x262   :  { %v1141_v39 = vmax.f32 %v1072_v37, 0.0 }
 0x264   :  { %1113 = vmatmul.bf16.gmra.mxu2 %v1628_v35  ;;  %v2480_v44 = vpack.c.bf16 %v1141_v39, %v1140_v38  ;;  %v729_v35 = vpop.permute.xlu0 %728 }
 0x265   :  { %v1007_v7 = vpop.f32.mrf.mxu1 }
 0x267   :  { %v1074_v32 = vpop.f32.mrf.mxu2 }
 0x268   :  { %v2483_v1 = vadd.f32 %v1074_v32, %v986_v21  ;;  %v719_v21 = vpop.permute.xlu2 %718 }
 0x269   :  { %v1006_v60 = vadd.f32 %v1005_v52, %v719_v21 }
 0x26a   :  { %v1142_v24 = vmax.f32 %v2483_v1, 0.0 }
 0x26c   :  { %v724_v45 = vpop.permute.xlu0 %723 }
 0x26d   :  { %v1010_v42 = vpop.f32.mrf.mxu1 }
 0x26e   :  { %v1011_v2 = vadd.f32 %v1010_v42, %v729_v35 }
 0x26f   :  { %v1076_v31 = vpop.f32.mrf.mxu2 }
 0x270   :  { %v1077_v63 = vadd.f32 %v1076_v31, %v988_v50 }
 0x272   :  { %v1143_v16 = vmax.f32 %v1077_v63, 0.0 }
 0x274   :  { %1118 = vmatmul.bf16.gmra.mxu2 %v1636_v40 }
 0x275   :  { %v1012_v38 = vpop.f32.mrf.mxu1 }
 0x277   :  { %v1079_v0 = vpop.f32.mrf.mxu2 }
 0x278   :  { %v1080_v57 = vadd.f32 %v1079_v0, %v991_v55 }
 0x27a   :  { %v1144_v36 = vmax.f32 %v1080_v57, 0.0  ;;  %v1671_v57 = vld [vmem:[%s2618_s5 + $0x20] sm:$0xf] }
 0x27d   :  { %v1015_v46 = vpop.f32.mrf.mxu1 }
 0x27f   :  { %v1081_v47 = vpop.f32.mrf.mxu2 }
 0x280   :  { %v1082_v4 = vadd.f32 %v1081_v47, %v993_v20  ;;  %v1008_v47 = vadd.f32 %v1007_v7, %v724_v45 }
 0x282   :  { %v1145_v12 = vmax.f32 %v1082_v4, 0.0 }
 0x284   :  { %1123 = vmatmul.bf16.gmra.mxu2 %v1644_v41  ;;  %v1179_v49 = vpack.c.bf16 %v1145_v12, %v1144_v36  ;;  %v1178_v41 = vpack.c.bf16 %v1143_v16, %v1142_v24 }
 0x287   :  { %v1084_v59 = vpop.f32.mrf.mxu2 }
 0x288   :  { %v1085_v34 = vadd.f32 %v1084_v59, %v996_v29  ;;  %v739_v59 = vpop.permute.xlu1 %738 }
 0x28a   :  { %v1146_v32 = vmax.f32 %v1085_v34, 0.0 }
 0x28f   :  { %v1086_v33 = vpop.f32.mrf.mxu2 }
 0x290   :  { %v1087_v27 = vadd.f32 %v1086_v33, %v998_v5  ;;  %v1017_v33 = vpop.f32.mrf.mxu1  ;;  %v734_v7 = vpop.permute.xlu1 %733  ;;  %v1735_v5 = vld [vmem:[%s2618_s5 + $0x4] sm:$0xf0] }
 0x291   :  { %v1013_v1 = vadd.f32 %v1012_v38, %v734_v7  ;;  %v1018_v34 = vadd.f32 %v1017_v33, %v2519_v15 }
 0x292   :  { %v1147_v9 = vmax.f32 %v1087_v27, 0.0 }
 0x294   :  { %1128 = vmatmul.bf16.gmra.mxu2 %v1652_v8  ;;  %v1180_v40 = vpack.c.bf16 %v1147_v9, %v1146_v32  ;;  %v1739_v32 = vld [vmem:[%s2618_s5 + $0x24] sm:$0xf0] }
 0x297   :  { %v1089_v11 = vpop.f32.mrf.mxu2 }
 0x298   :  { %v1090_v22 = vadd.f32 %v1089_v11, %v1001_v6  ;;  %v1655_v6 = vld [vmem:[%s2618_s5] sm:$0xf] }
 0x29a   :  { %v1148_v56 = vmax.f32 %v1090_v22, 0.0  ;;  %v1656_v22 = vor.u32 %v1735_v5, %v1655_v6 }
 0x29f   :  { %v1091_v30 = vpop.f32.mrf.mxu2 }
 0x2a0   :  { %v1092_v51 = vadd.f32 %v1091_v30, %v1003_v19 }
 0x2a2   :  { %v1149_v37 = vmax.f32 %v1092_v51, 0.0 }
 0x2a4   :  { %v1181_v39 = vpack.c.bf16 %v1149_v37, %v1148_v56  ;;  %v1663_v56 = vld [vmem:[%s2618_s5 + $0x10] sm:$0xf]  ;;  %v1737_v37 = vld [vmem:[%s2618_s5 + $0x14] sm:$0xf0] }
 0x2a6   :  { %1278 = vmatpush.bf16.msrb.mxu3 %v1181_v39 }
 0x2a7   :  { %v1094_v23 = vpop.f32.mrf.mxu2 }
 0x2a8   :  { %v1095_v13 = vadd.f32 %v1094_v23, %v1006_v60 }
 0x2aa   :  { %1279 = vmatpush.bf16.msrb.mxu3 %v1180_v40  ;;  %v1150_v52 = vmax.f32 %v1095_v13, 0.0  ;;  %v1672_v13 = vor.u32 %v1739_v32, %v1671_v57  ;;  %v1681_v57 = vld [vmem:[%s2618_s5 + $0x38] sm:$0xf0] }
 0x2ae   :  { %1280 = vmatpush.bf16.msrb.mxu3 %v1179_v49 }
 0x2af   :  { %v1096_v53 = vpop.f32.mrf.mxu2 }
 0x2b0   :  { %v1097_v0 = vadd.f32 %v1096_v53, %v1008_v47  ;;  %v1741_v47 = vld [vmem:[%s2618_s5 + $0x34] sm:$0xf0] }
 0x2b2   :  { %v1151_v31 = vmax.f32 %v1097_v0, 0.0  ;;  %1281 = vmatpush.bf16.msrb.mxu3 %v1178_v41 }
 0x2b4   :  { %v2535_v61 = vpack.c.bf16 %v1151_v31, %v1150_v52 }
 0x2b6   :  { %1282 = vmatpush.bf16.msrb.mxu3 %v2480_v44  ;;  %v1020_v44 = vpop.f32.mrf.mxu1 }
 0x2b7   :  { %v1099_v8 = vpop.f32.mrf.mxu2  ;;  %v1021_v21 = vadd.f32 %v1020_v44, %v2513_v17 }
 0x2b8   :  { %v1100_v11 = vadd.f32 %v1099_v8, %v1011_v2 }
 0x2ba   :  { %1283 = vmatpush.bf16.msrb.mxu3 %v2469_v25  ;;  %v1152_v30 = vmax.f32 %v1100_v11, 0.0 }
 0x2be   :  { %1284 = vmatpush.bf16.msrb.mxu3 %v2451_v43  ;;  %v1016_v43 = vadd.f32 %v1015_v46, %v739_v59  ;;  %v1022_v20 = vpop.f32.mrf.mxu1  ;;  %v1679_v46 = vld [vmem:[%s2618_s5 + $0x30] sm:$0xf] }
 0x2bf   :  { %v1101_v42 = vpop.f32.mrf.mxu2  ;;  %v1023_v60 = vadd.f32 %v1022_v20, %v2517_v62  ;;  %v1680_v53 = vor.u32 %v1741_v47, %v1679_v46 }
 0x2c0   :  { %v1102_v19 = vadd.f32 %v1101_v42, %v1013_v1 }
 0x2c2   :  { %v1153_v29 = vmax.f32 %v1102_v19, 0.0  ;;  %1285 = vmatpush.bf16.msrb.mxu3 %v2434_v28  ;;  %v1664_v28 = vor.u32 %v1737_v37, %v1663_v56 }
 0x2c4   :  { %v2547_v25 = vpack.c.bf16 %v1153_v29, %v1152_v30 }
 0x2c5   :  { %1286 = vmatmul.bf16.vlgmr.msrb.gmra.mxu3 %v1656_v22 }
 0x2c6   :  { %v1025_v39 = vpop.f32.mrf.mxu1 }
 0x2c7   :  { %v1104_v27 = vpop.f32.mrf.mxu2  ;;  %v1026_v17 = vadd.f32 %v1025_v39, %v2511_v3 }
 0x2c8   :  { %v1105_v51 = vadd.f32 %v1104_v27, %v1016_v43 }
 0x2ca   :  { %v1154_v55 = vmax.f32 %v1105_v51, 0.0 }
 0x2ce   :  { %v1027_v23 = vpop.f32.mrf.mxu1 }
 0x2cf   :  { %v1106_v35 = vpop.f32.mrf.mxu2 }
 0x2d0   :  { %v1107_v38 = vadd.f32 %v1106_v35, %v1018_v34 }
 0x2d2   :  { %v1155_v4 = vmax.f32 %v1107_v38, 0.0 }
 0x2d4   :  { %v2556_v9 = vpack.c.bf16 %v1155_v4, %v1154_v55 }
 0x2d5   :  { %1291 = vmatmul.bf16.gmra.mxu3 %v1664_v28 }
 0x2d6   :  { %v1030_v45 = vpop.f32.mrf.mxu1 }
 0x2d7   :  { %v1109_v15 = vpop.f32.mrf.mxu2  ;;  %v1031_v51 = vadd.f32 %v1030_v45, %v2524_v18  ;;  %v1734_v18 = vld [vmem:[%s2618_s5 + $0x4] sm:$0xf]  ;;  %v1211_v45 = vpop.permute.xlu0 %1210 }
 0x2d8   :  { %v1110_v50 = vadd.f32 %v1109_v15, %v1021_v21  ;;  %v1736_v21 = vld [vmem:[%s2618_s5 + $0x14] sm:$0xf]  ;;  %v1738_v15 = vld [vmem:[%s2618_s5 + $0x24] sm:$0xf] }
 0x2da   :  { %v1156_v40 = vmax.f32 %v1110_v50, 0.0  ;;  %v1673_v50 = vld [vmem:[%s2618_s5 + $0x28] sm:$0xf0] }
 0x2de   :  { %v1032_v0 = vpop.f32.mrf.mxu1 }
 0x2df   :  { %v1111_v63 = vpop.f32.mrf.mxu2  ;;  %v1033_v30 = vadd.f32 %v1032_v0, %v2503_v54 }
 0x2e0   :  { %v1112_v12 = vadd.f32 %v1111_v63, %v1023_v60  ;;  %v1740_v60 = vld [vmem:[%s2618_s5 + $0x34] sm:$0xf] }
 0x2e1   :  { %v1684_v32 = vor.u32 %v1740_v60, %v1681_v57 }
 0x2e2   :  { %v1157_v36 = vmax.f32 %v1112_v12, 0.0 }
 0x2e4   :  { %v1185_v16 = vpack.c.bf16 %v1157_v36, %v1156_v40 }
 0x2e5   :  { %1296 = vmatmul.bf16.gmra.mxu3 %v1672_v13 }
 0x2e6   :  { %v1035_v52 = vpop.f32.mrf.mxu1 }
 0x2e7   :  { %v1114_v49 = vpop.f32.mrf.mxu2  ;;  %v1036_v19 = vadd.f32 %v1035_v52, %v2493_v58 }
 0x2e8   :  { %v1115_v62 = vadd.f32 %v1114_v49, %v1026_v17  ;;  %v1201_v17 = vpop.permute.xlu1 %1200 }
 0x2ea   :  { %v1158_v55 = vmax.f32 %v1115_v62, 0.0  ;;  %v1206_v62 = vpop.permute.xlu2 %1205 }
 0x2ee   :  { %v1037_v59 = vpop.f32.mrf.mxu1 }
 0x2ef   :  { %v1116_v24 = vpop.f32.mrf.mxu2  ;;  %v1038_v1 = vadd.f32 %v1037_v59, %v2501_v48  ;;  %v1028_v48 = vadd.f32 %v1027_v23, %v2532_v14  ;;  %v1657_v14 = vld [vmem:[%s2618_s5 + $0x8] sm:$0xf0] }
 0x2f0   :  { %v1660_v39 = vor.u32 %v1734_v18, %v1657_v14  ;;  %v1216_v47 = vpop.permute.xlu1 %1215 }
 0x2f1   :  { %v1117_v37 = vadd.f32 %v1116_v24, %v1028_v48 }
 0x2f3   :  { %v1159_v28 = vmax.f32 %v1117_v37, 0.0 }
 0x2f5   :  { %1301 = vmatmul.bf16.gmra.mxu3 %v1680_v53  ;;  %v1186_v4 = vpack.c.bf16 %v1159_v28, %v1158_v55 }
 0x2f6   :  { %v1040_v33 = vpop.f32.mrf.mxu1 }
 0x2f7   :  { %v1119_v41 = vpop.f32.mrf.mxu2  ;;  %v1041_v7 = vadd.f32 %v1040_v33, %v2491_v26 }
 0x2f8   :  { %v1120_v56 = vadd.f32 %v1119_v41, %v1031_v51  ;;  %v1221_v41 = vpop.permute.xlu2 %1220  ;;  %v1360_v33 = vpop.permute.xlu1 %1359 }
 0x2fa   :  { %v1160_v38 = vmax.f32 %v1120_v56, 0.0 }
 0x2fe   :  { %v1042_v11 = vpop.f32.mrf.mxu1 }
 0x2ff   :  { %v1121_v31 = vpop.f32.mrf.mxu2  ;;  %v1043_v6 = vadd.f32 %v1042_v11, %v2515_v10 }
 0x300   :  { %v1122_v20 = vadd.f32 %v1121_v31, %v1033_v30  ;;  %v1231_v51 = vpop.permute.xlu1 %1230 }
 0x302   :  { %v1161_v35 = vmax.f32 %v1122_v20, 0.0 }
 0x304   :  { %v1187_v54 = vpack.c.bf16 %v1161_v35, %v1160_v38 }
 0x307   :  { %v1124_v3 = vpop.f32.mrf.mxu2 }
 0x308   :  { %v1125_v29 = vadd.f32 %v1124_v3, %v1036_v19  ;;  %v1355_v3 = vpop.permute.xlu0 %1354 }
 0x30a   :  { %v1162_v10 = vmax.f32 %v1125_v29, 0.0 }
 0x30f   :  { %v1126_v2 = vpop.f32.mrf.mxu2 }
 0x310   :  { %v1127_v44 = vadd.f32 %v1126_v2, %v1038_v1 }
 0x312   :  { %v1163_v34 = vmax.f32 %v1127_v44, 0.0  ;;  %v1365_v44 = vpop.permute.xlu0 %1364 }
 0x314   :  { %v1188_v58 = vpack.c.bf16 %v1163_v34, %v1162_v10 }
 0x317   :  { %v1129_v8 = vpop.f32.mrf.mxu2 }
 0x318   :  { %v1130_v5 = vadd.f32 %v1129_v8, %v1041_v7 }
 0x31a   :  { %v1164_v43 = vmax.f32 %v1130_v5, 0.0  ;;  %v1236_v18 = vpop.permute.xlu0 %1235 }
 0x31f   :  { %v1131_v42 = vpop.f32.mrf.mxu2 }
 0x320   :  { %v1132_v22 = vadd.f32 %v1131_v42, %v1043_v6  ;;  %v1226_v42 = vpop.permute.xlu2 %1225 }
 0x322   :  { %v1165_v27 = vmax.f32 %v1132_v22, 0.0  ;;  %v1385_v60 = vpop.permute.xlu0 %1384 }
 0x324   :  { %v1189_v26 = vpack.c.bf16 %v1165_v27, %v1164_v43 }
 0x326   :  { %1307 = vmatpush.bf16.msra.mxu3 %v1189_v26 }
 0x328   :  { %v1370_v34 = vpop.permute.xlu2 %1369 }
 0x32a   :  { %1308 = vmatpush.bf16.msra.mxu3 %v1188_v58  ;;  %v1375_v58 = vpop.permute.xlu1 %1374 }
 0x32e   :  { %1309 = vmatpush.bf16.msra.mxu3 %v1187_v54 }
 0x332   :  { %1310 = vmatpush.bf16.msra.mxu3 %v1186_v4 }
 0x336   :  { %1311 = vmatpush.bf16.msra.mxu3 %v1185_v16 }
 0x33a   :  { %1312 = vmatpush.bf16.msra.mxu3 %v2556_v9 }
 0x33e   :  { %1313 = vmatpush.bf16.msra.mxu3 %v2547_v25  ;;  %v1665_v25 = vld [vmem:[%s2618_s5 + $0x18] sm:$0xf0] }
 0x33f   :  { %v1668_v9 = vor.u32 %v1736_v21, %v1665_v25 }
 0x342   :  { %1314 = vmatpush.bf16.msra.mxu3 %v2535_v61  ;;  %v1676_v61 = vor.u32 %v1738_v15, %v1673_v50 }
 0x345   :  { %1315 = vmatmul.bf16.vlgmr.msra.gmra.mxu3 %v1660_v39  ;;  %v1380_v39 = vpop.permute.xlu2 %1379 }
 0x348   :  { %v1287_v23 = vpop.f32.mrf.mxu3 }
 0x349   :  { %v1288_v24 = vadd.f32 %v1287_v23, %v1201_v17 }
 0x350   :  { %v1289_v63 = vpop.f32.mrf.mxu3 }
 0x351   :  { %v1290_v0 = vadd.f32 %v1289_v63, %v1206_v62 }
 0x355   :  { %1320 = vmatmul.bf16.gmra.mxu3 %v1668_v9 }
 0x358   :  { %v1292_v12 = vpop.f32.mrf.mxu3 }
 0x359   :  { %v1293_v7 = vadd.f32 %v1292_v12, %v1211_v45 }
 0x360   :  { %v1294_v13 = vpop.f32.mrf.mxu3 }
 0x361   :  { %v1295_v30 = vadd.f32 %v1294_v13, %v1216_v47 }
 0x365   :  { %1325 = vmatmul.bf16.gmra.mxu3 %v1676_v61 }
 0x368   :  { %v1297_v40 = vpop.f32.mrf.mxu3 }
 0x369   :  { %v1298_v48 = vadd.f32 %v1297_v40, %v1221_v41  ;;  %v1390_v40 = vpop.permute.xlu1 %1389 }
 0x370   :  { %v1299_v36 = vpop.f32.mrf.mxu3 }
 0x371   :  { %v1300_v28 = vadd.f32 %v1299_v36, %v1226_v42 }
 0x375   :  { %1330 = vmatmul.bf16.gmra.mxu3 %v1684_v32 }
 0x378   :  { %v1302_v16 = vpop.f32.mrf.mxu3 }
 0x379   :  { %v1303_v25 = vadd.f32 %v1302_v16, %v1231_v51 }
 0x380   :  { %v1304_v49 = vpop.f32.mrf.mxu3 }
 0x381   :  { %v1305_v32 = vadd.f32 %v1304_v49, %v1236_v18 }
 0x3c8   :  { %v1316_v46 = vpop.f32.mrf.mxu3 }
 0x3c9   :  { %v1317_v53 = vadd.f32 %v1316_v46, %v1288_v24  ;;  %v1417_v24 = vpop.permute.xlu2 %1416 }
 0x3cb   :  { %v1336_v31 = vmax.f32 %v1317_v53, 0.0  ;;  %v1419_v53 = vperm.slane %v1417_v24, 0 }
 0x3cd   :  { %v1392_v8 = vmul.f32 %v1355_v3, %v1336_v31 }
 0x3d0   :  { %v1318_v52 = vpop.f32.mrf.mxu3 }
 0x3d1   :  { %v1319_v59 = vadd.f32 %v1318_v52, %v1290_v0 }
 0x3d3   :  { %v1337_v2 = vmax.f32 %v1319_v59, 0.0 }
 0x3d5   :  { %v1393_v11 = vmul.f32 %v1360_v33, %v1337_v2 }
 0x3d7   :  { %v1400_v1 = vadd.f32 %v1393_v11, %v1392_v8 }
 0x3d8   :  { %v1321_v6 = vpop.f32.mrf.mxu3 }
 0x3d9   :  { %v1322_v5 = vadd.f32 %v1321_v6, %v1293_v7 }
 0x3db   :  { %v1338_v19 = vmax.f32 %v1322_v5, 0.0 }
 0x3dd   :  { %v1394_v22 = vmul.f32 %v1365_v44, %v1338_v19 }
 0x3df   :  { %v1401_v29 = vadd.f32 %v1400_v1, %v1394_v22 }
 0x3e0   :  { %v1323_v43 = vpop.f32.mrf.mxu3 }
 0x3e1   :  { %v1324_v27 = vadd.f32 %v1323_v43, %v1295_v30 }
 0x3e3   :  { %v1339_v20 = vmax.f32 %v1324_v27, 0.0 }
 0x3e5   :  { %v1395_v26 = vmul.f32 %v1370_v34, %v1339_v20 }
 0x3e7   :  { %v1402_v56 = vadd.f32 %v1401_v29, %v1395_v26 }
 0x3e8   :  { %v1326_v10 = vpop.f32.mrf.mxu3 }
 0x3e9   :  { %v1327_v37 = vadd.f32 %v1326_v10, %v1298_v48 }
 0x3eb   :  { %v1340_v35 = vmax.f32 %v1327_v37, 0.0 }
 0x3ed   :  { %v1396_v38 = vmul.f32 %v1375_v58, %v1340_v35 }
 0x3ef   :  { %v1403_v54 = vadd.f32 %v1402_v56, %v1396_v38 }
 0x3f0   :  { %v1328_v55 = vpop.f32.mrf.mxu3 }
 0x3f1   :  { %v1329_v4 = vadd.f32 %v1328_v55, %v1300_v28 }
 0x3f3   :  { %v1341_v14 = vmax.f32 %v1329_v4, 0.0 }
 0x3f5   :  { %v1397_v21 = vmul.f32 %v1380_v39, %v1341_v14 }
 0x3f7   :  { %v1404_v9 = vadd.f32 %v1403_v54, %v1397_v21 }
 0x3f8   :  { %v1331_v15 = vpop.f32.mrf.mxu3 }
 0x3f9   :  { %v1332_v50 = vadd.f32 %v1331_v15, %v1303_v25 }
 0x3fb   :  { %v1342_v61 = vmax.f32 %v1332_v50, 0.0 }
 0x3fd   :  { %v1398_v57 = vmul.f32 %v1385_v60, %v1342_v61 }
 0x3ff   :  { %v1405_v23 = vadd.f32 %v1404_v9, %v1398_v57 }
 0x400   :  { %v1333_v63 = vpop.f32.mrf.mxu3 }
 0x401   :  { %v1334_v12 = vadd.f32 %v1333_v63, %v1305_v32 }
 0x403   :  { %v1343_v13 = vmax.f32 %v1334_v12, 0.0 }
 0x405   :  { %v1399_v36 = vmul.f32 %v1390_v40, %v1343_v13 }
 0x407   :  { %v1406_v17 = vadd.f32 %v1405_v23, %v1399_v36 }
 0x409   :  { %v1407_v62 = vrot.slane %v1406_v17, 4 }
 0x40b   :  { %v1408_v45 = vadd.f32 %v1407_v62, %v1406_v17 }
 0x40d   :  { %v1409_v46 = vrot.slane %v1408_v45, 2 }
 0x40f   :  { %v1410_v47 = vadd.f32 %v1409_v46, %v1408_v45 }
 0x411   :  { %v1411_v16 = vrot.slane %v1410_v47, 1 }
 0x413   :  { %v1412_v0 = vadd.f32 %v1411_v16, %v1410_v47 }
 0x415   :  { %v1420_v41 = vadd.f32 %v1419_v53, %v1412_v0 }
 0x417   :  { %v1685_v52 = vmul.f32 -1.442695, %v1420_v41 }
 0x419   :  { %1754 = vpow2.f32 %v1685_v52 }
 0x41f   :  { %v1755_v31 = vpop.eup %1754 }
 0x420   :  { %v1424_v49 = vadd.f32 1.0, %v1755_v31 }
 0x422   :  { %1756 = vrcp.f32 %v1424_v49  ;;  %v1436_v33 = vand.u32 2147483648, %v1424_v49  ;;  %v1434_v11 = vand.u32 2147483647, %v1424_v49  ;;  %vm1430_vm2 = vweird.f32 %v1424_v49 }
 0x424   :  { %v1437_v1 = vor.u32 1.1754944e-38, %v1436_v33  ;;  %vm1435_vm4 = vcmp.eq.f32.partialorder %v1434_v11, 8.507059e+37 }
 0x428   :  { %v1757_v59 = vpop.eup %1756 }
 0x429   :  { %v1426_v3 = vmul.f32 %v1757_v59, %v1424_v49  ;;  %vm1431_vm1 = vweird.f32 %v1757_v59 }
 0x42a   :  { %vm1432_vm3 = vmor %vm1430_vm2, %vm1431_vm1 }
 0x42b   :  { %v1427_v2 = vsub.f32 1.0, %v1426_v3 }
 0x42d   :  { %v1428_v8 = vmul.f32 %v1757_v59, %v1427_v2 }
 0x42f   :  { %v1429_v7 = vadd.f32 %v1757_v59, %v1428_v8 }
 0x431   :  { %v1433_v6 = vsel %vm1432_vm3, %v1757_v59, %v1429_v7 }
 0x432   :  { %v1438_v5 = vsel %vm1435_vm4, %v1437_v1, %v1433_v6 }
 0x433   :  { %1440 = vst [vmem:[%s2619_s9] sm:$0x1] %v1438_v5 }

</bundles_post_ra>
